<compile_context>
chip_gen: v7x
topology: tpu7x:2x2x1
jax: 0.10.0
libtpu: 0.0.40
codegen_flags: <defaults>
</compile_context>

<pallas_src>
from functools import partial

import numpy as np
import jax
import jax.numpy as jnp
from jax.experimental import pallas as pl
from jax.experimental.pallas import tpu as pltpu


def _bilinear_matrix(n_in, n_out):
    """(n_out, n_in) interpolation matrix, align_corners=True
    (matches nn.UpsamplingBilinear2d).  Requires n_in > 1."""
    assert n_in > 1, "bilinear x2 upsample needs spatial size > 1"
    src = np.arange(n_out, dtype=np.float64) * (n_in - 1) / (n_out - 1)
    i0 = np.clip(np.floor(src).astype(np.int64), 0, n_in - 2)
    frac = src - i0
    R = np.zeros((n_out, n_in), dtype=np.float64)
    R[np.arange(n_out), i0] += 1.0 - frac
    R[np.arange(n_out), i0 + 1] += frac
    return R


def _halo_masks(H, W):
    """(9, 1, H*W) f32 validity masks for the 3x3 taps, tap k = (dy+1)*3+(dx+1)."""
    hh, ww = np.meshgrid(np.arange(H), np.arange(W), indexing="ij")
    masks = np.zeros((9, 1, H * W), np.float32)
    k = 0
    for dy in (-1, 0, 1):
        for dx in (-1, 0, 1):
            valid = ((hh + dy >= 0) & (hh + dy < H) &
                     (ww + dx >= 0) & (ww + dx < W))
            masks[k, 0, :] = valid.reshape(-1).astype(np.float32)
            k += 1
    return masks


def _make_kernel(H, W, mxu_dtype):
    HW = H * W

    def kernel(x1_ref, x2_ref, w1a_ref, w1b_ref, b1_ref, w2_ref, b2_ref,
               masks_ref, u_ref, o_ref):
        # x*_ref : (1, C, HW) f32        lane-dense activations (HW on lanes)
        # w*_ref : (9, Cout, Ci) mxu_dt  per-tap weight matrices
        # b*_ref : (Cout, 1) f32
        # masks  : (9, 1, HW) f32        zero-padding halo masks
        # u_ref  : (HW, 4*HW) mxu_dt     kron(Rh, Rw)^T (bilinear x2)
        # o_ref  : (1, Cout, 4*HW)
        m = [masks_ref[k] for k in range(9)]          # preload the 9 masks

        def conv_taps(x_f32, w_ref):
            # shift-and-accumulate 3x3 conv: 9 lane rolls (XLU) + 9 MXU dots,
            # no pad buffer, no im2col temp; f32 accumulation.
            acc = None
            k = 0
            for dy in (-1, 0, 1):
                for dx in (-1, 0, 1):
                    s = dy * W + dx                    # flat tap offset
                    shifted = x_f32 if s == 0 else pltpu.roll(
                        x_f32, shift=(-s) % HW, axis=1)
                    tap = (shifted * m[k]).astype(mxu_dtype)   # mask in f32
                    d = jnp.dot(w_ref[k], tap,
                                preferred_element_type=jnp.float32)
                    acc = d if acc is None else acc + d
                    k += 1
            return acc                                 # (Cout, HW) f32

        # conv1 + bias + ReLU; channel concat folded into split weight blocks.
        a1 = conv_taps(x1_ref[0], w1a_ref) + conv_taps(x2_ref[0], w1b_ref)
        h1 = jnp.maximum(a1 + b1_ref[...], 0.0)        # (Cout, HW) f32

        # conv2 + bias + ReLU.
        h2 = jnp.maximum(conv_taps(h1, w2_ref) + b2_ref[...], 0.0)

        # bilinear x2 upsample (align_corners=True): one MXU dot that lands
        # directly in the lane-dense (Cout, 4*HW) store layout.
        up = jnp.dot(h2.astype(mxu_dtype), u_ref[...],
                     preferred_element_type=jnp.float32)
        o_ref[0] = up.astype(o_ref.dtype)

    return kernel


@partial(jax.jit, static_argnames=("mxu_dtype",))
def unet_up_forward(inputs1, inputs2, w1_oihw, b1, w2_oihw, b2,
                    mxu_dtype=jnp.bfloat16):
    """NCHW in / NCHW out; same semantics as the PyTorch unetUp module."""
    N, C1, H, W = inputs1.shape
    C2 = inputs2.shape[1]
    Cin = C1 + C2
    Cout = w1_oihw.shape[0]
    HW = H * W

    # Lane-dense activation layout (free row-major reshape).
    x1 = inputs1.reshape(N, C1, HW)
    x2 = inputs2.reshape(N, C2, HW)

    # Per-tap weight matrices, tap order k = (dy+1)*3 + (dx+1).
    def taps(w):
        return jnp.transpose(w, (2, 3, 0, 1)).reshape(9, w.shape[0], w.shape[1])

    w1a = taps(w1_oihw[:, :C1, :, :]).astype(mxu_dtype)    # (9, Cout, C1)
    w1b = taps(w1_oihw[:, C1:, :, :]).astype(mxu_dtype)    # (9, Cout, C2)
    w2t = taps(w2_oihw).astype(mxu_dtype)                  # (9, Cout, Cout)
    b1m = b1.reshape(Cout, 1).astype(jnp.float32)
    b2m = b2.reshape(Cout, 1).astype(jnp.float32)

    masks = jnp.asarray(_halo_masks(H, W))                 # (9, 1, HW) f32

    # Bilinear x2 as a single matmul: U = kron(Rh, Rw)^T, out = h2 @ U.
    u_np = np.kron(_bilinear_matrix(H, 2 * H),
                   _bilinear_matrix(W, 2 * W)).T.astype(np.float32)
    u = jnp.asarray(u_np).astype(mxu_dtype)                # (HW, 4*HW)
    # TODO(synk): for large H*W replace kron-U (O(HW^2) operand) with a
    # separable W-then-H matmul path inside the kernel.

    itemsize = jnp.dtype(mxu_dtype).itemsize
    cost = pl.CostEstimate(
        flops=int(2 * N * HW * 9 * (Cin * Cout + Cout * Cout)
                  + 2 * N * Cout * HW * (4 * HW)),
        transcendentals=0,
        bytes_accessed=int(
            4 * (x1.size + x2.size + b1m.size + b2m.size + masks.size
                 + N * Cout * 4 * HW)
            + itemsize * (w1a.size + w1b.size + w2t.size + u.size)))

    kernel = _make_kernel(H, W, mxu_dtype)

    out = pl.pallas_call(
        kernel,
        out_shape=jax.ShapeDtypeStruct((N, Cout, 4 * HW), inputs1.dtype),
        grid=(N,),
        in_specs=[
            pl.BlockSpec((1, C1, HW), lambda n: (n, 0, 0)),
            pl.BlockSpec((1, C2, HW), lambda n: (n, 0, 0)),
            pl.BlockSpec((9, Cout, C1), lambda n: (0, 0, 0)),
            pl.BlockSpec((9, Cout, C2), lambda n: (0, 0, 0)),
            pl.BlockSpec((Cout, 1), lambda n: (0, 0)),
            pl.BlockSpec((9, Cout, Cout), lambda n: (0, 0, 0)),
            pl.BlockSpec((Cout, 1), lambda n: (0, 0)),
            pl.BlockSpec((9, 1, HW), lambda n: (0, 0, 0)),
            pl.BlockSpec((HW, 4 * HW), lambda n: (0, 0)),
        ],
        out_specs=pl.BlockSpec((1, Cout, 4 * HW), lambda n: (n, 0, 0)),
        compiler_params=pltpu.CompilerParams(
            dimension_semantics=("parallel",),
            vmem_limit_bytes=32 * 1024 * 1024),
        cost_estimate=cost,
        # TODO(synk): at real UNet decoder sizes add row-strip spatial tiling
        # (1-row halo per conv) plus a second "parallel" grid axis so both v7x
        # TensorCores are used when N is 1-2 and live VMEM stays < ~48 MiB.
    )(x1, x2, w1a, w1b, b1m, w2t, b2m, masks, u)

    # Free (row-major) reshape back to NCHW.
    return out.reshape(N, Cout, 2 * H, 2 * W)


# ----------------------------------------------------------------------------
# Pure-JAX reference (same math) for a sanity check
# ----------------------------------------------------------------------------
def reference(inputs1, inputs2, w1, b1, w2, b2):
    hp = jax.lax.Precision.HIGHEST
    dn = ("NCHW", "OIHW", "NCHW")
    x = jnp.concatenate([inputs1, inputs2], axis=1)
    x = jax.lax.conv_general_dilated(x, w1, (1, 1), ((1, 1), (1, 1)),
                                     dimension_numbers=dn, precision=hp)
    x = jax.nn.relu(x + b1[None, :, None, None])
    x = jax.lax.conv_general_dilated(x, w2, (1, 1), ((1, 1), (1, 1)),
                                     dimension_numbers=dn, precision=hp)
    x = jax.nn.relu(x + b2[None, :, None, None])
    _, _, H, W = x.shape
    rh = jnp.asarray(_bilinear_matrix(H, 2 * H), jnp.float32)
    rw = jnp.asarray(_bilinear_matrix(W, 2 * W), jnp.float32)
    x = jnp.einsum("ph,nchw->ncpw", rh, x, precision=hp)
    x = jnp.einsum("qw,ncpw->ncpq", rw, x, precision=hp)
    return x


if __name__ == "__main__":
    key = jax.random.PRNGKey(0)
    k1, k2, k3, k4, k5, k6 = jax.random.split(key, 6)

    N, C1, C2, H, W = 2, 4, 4, 16, 16
    in_size, out_size = C1 + C2, 8

    inputs1 = jax.random.normal(k1, (N, C1, H, W), jnp.float32)
    inputs2 = jax.random.normal(k2, (N, C2, H, W), jnp.float32)
    # deterministic synthetic parameters (shapes from nn.Conv2d in __init__)
    w1 = 0.1 * jax.random.normal(k3, (out_size, in_size, 3, 3), jnp.float32)
    b1 = 0.1 * jax.random.normal(k4, (out_size,), jnp.float32)
    w2 = 0.1 * jax.random.normal(k5, (out_size, out_size, 3, 3), jnp.float32)
    b2 = 0.1 * jax.random.normal(k6, (out_size,), jnp.float32)

    ref = jax.block_until_ready(reference(inputs1, inputs2, w1, b1, w2, b2))

    # f32 MXU path: strict check that the roll+mask conv / kron upsample math
    # is exactly the module's forward pass.
    out_f32 = jax.block_until_ready(
        unet_up_forward(inputs1, inputs2, w1, b1, w2, b2,
                        mxu_dtype=jnp.float32))
    assert out_f32.shape == (N, out_size, 2 * H, 2 * W), out_f32.shape
    assert jnp.allclose(out_f32, ref, atol=2e-3, rtol=2e-3), (
        float(jnp.max(jnp.abs(out_f32 - ref))))

    # bf16 MXU path (default; fast path on v6e/v7x): looser tolerance.
    out_bf16 = jax.block_until_ready(
        unet_up_forward(inputs1, inputs2, w1, b1, w2, b2))
    assert out_bf16.shape == (N, out_size, 2 * H, 2 * W), out_bf16.shape
    assert jnp.allclose(out_bf16, ref, atol=5e-2, rtol=5e-2), (
        float(jnp.max(jnp.abs(out_bf16 - ref))))

    print("KERNEL_OK")
</pallas_src>

<mosaic_0001>
module attributes {stable_mosaic.version = 11 : i64} {
  func.func @kernel(%arg0: i32, %arg1: memref<1x4x256xf32, #tpu.memory_space<vmem>>, %arg2: memref<1x4x256xf32, #tpu.memory_space<vmem>>, %arg3: memref<9x8x4xf32, #tpu.memory_space<vmem>>, %arg4: memref<9x8x4xf32, #tpu.memory_space<vmem>>, %arg5: memref<8x1xf32, #tpu.memory_space<vmem>>, %arg6: memref<9x8x8xf32, #tpu.memory_space<vmem>>, %arg7: memref<8x1xf32, #tpu.memory_space<vmem>>, %arg8: memref<9x1x256xf32, #tpu.memory_space<vmem>>, %arg9: memref<256x1024xf32, #tpu.memory_space<vmem>>, %arg10: memref<1x8x1024xf32, #tpu.memory_space<vmem>>) attributes {dimension_semantics = [#tpu.dimension_semantics<parallel>], iteration_bounds = array<i64: 2>, scalar_prefetch = 0 : i64, scratch_operands = 0 : i64, tpu.core_type = #tpu.core_type<tc>, window_params = [{transform_indices = @transform_0, window_bounds = array<i64: 1, 4, 256>}, {transform_indices = @transform_1, window_bounds = array<i64: 1, 4, 256>}, {pipeline_mode = #tpu.pipeline_mode<synchronous>, transform_indices = @transform_2, window_bounds = array<i64: 9, 8, 4>}, {pipeline_mode = #tpu.pipeline_mode<synchronous>, transform_indices = @transform_3, window_bounds = array<i64: 9, 8, 4>}, {pipeline_mode = #tpu.pipeline_mode<synchronous>, transform_indices = @transform_4, window_bounds = array<i64: 8, 1>}, {pipeline_mode = #tpu.pipeline_mode<synchronous>, transform_indices = @transform_5, window_bounds = array<i64: 9, 8, 8>}, {pipeline_mode = #tpu.pipeline_mode<synchronous>, transform_indices = @transform_6, window_bounds = array<i64: 8, 1>}, {pipeline_mode = #tpu.pipeline_mode<synchronous>, transform_indices = @transform_7, window_bounds = array<i64: 9, 1, 256>}, {pipeline_mode = #tpu.pipeline_mode<synchronous>, transform_indices = @transform_8, window_bounds = array<i64: 256, 1024>}, {transform_indices = @transform_9, window_bounds = array<i64: 1, 8, 1024>}]} {
    %c0 = arith.constant 0 : index
    %c0_0 = arith.constant 0 : index
    %c0_1 = arith.constant 0 : index
    %0 = vector.load %arg8[%c0, %c0_0, %c0_1] : memref<9x1x256xf32, #tpu.memory_space<vmem>>, vector<1x1x256xf32>
    %1 = vector.shape_cast %0 : vector<1x1x256xf32> to vector<1x256xf32>
    %c1 = arith.constant 1 : index
    %c0_2 = arith.constant 0 : index
    %c0_3 = arith.constant 0 : index
    %2 = vector.load %arg8[%c1, %c0_2, %c0_3] : memref<9x1x256xf32, #tpu.memory_space<vmem>>, vector<1x1x256xf32>
    %3 = vector.shape_cast %2 : vector<1x1x256xf32> to vector<1x256xf32>
    %c2 = arith.constant 2 : index
    %c0_4 = arith.constant 0 : index
    %c0_5 = arith.constant 0 : index
    %4 = vector.load %arg8[%c2, %c0_4, %c0_5] : memref<9x1x256xf32, #tpu.memory_space<vmem>>, vector<1x1x256xf32>
    %5 = vector.shape_cast %4 : vector<1x1x256xf32> to vector<1x256xf32>
    %c3 = arith.constant 3 : index
    %c0_6 = arith.constant 0 : index
    %c0_7 = arith.constant 0 : index
    %6 = vector.load %arg8[%c3, %c0_6, %c0_7] : memref<9x1x256xf32, #tpu.memory_space<vmem>>, vector<1x1x256xf32>
    %7 = vector.shape_cast %6 : vector<1x1x256xf32> to vector<1x256xf32>
    %c4 = arith.constant 4 : index
    %c0_8 = arith.constant 0 : index
    %c0_9 = arith.constant 0 : index
    %8 = vector.load %arg8[%c4, %c0_8, %c0_9] : memref<9x1x256xf32, #tpu.memory_space<vmem>>, vector<1x1x256xf32>
    %9 = vector.shape_cast %8 : vector<1x1x256xf32> to vector<1x256xf32>
    %c5 = arith.constant 5 : index
    %c0_10 = arith.constant 0 : index
    %c0_11 = arith.constant 0 : index
    %10 = vector.load %arg8[%c5, %c0_10, %c0_11] : memref<9x1x256xf32, #tpu.memory_space<vmem>>, vector<1x1x256xf32>
    %11 = vector.shape_cast %10 : vector<1x1x256xf32> to vector<1x256xf32>
    %c6 = arith.constant 6 : index
    %c0_12 = arith.constant 0 : index
    %c0_13 = arith.constant 0 : index
    %12 = vector.load %arg8[%c6, %c0_12, %c0_13] : memref<9x1x256xf32, #tpu.memory_space<vmem>>, vector<1x1x256xf32>
    %13 = vector.shape_cast %12 : vector<1x1x256xf32> to vector<1x256xf32>
    %c7 = arith.constant 7 : index
    %c0_14 = arith.constant 0 : index
    %c0_15 = arith.constant 0 : index
    %14 = vector.load %arg8[%c7, %c0_14, %c0_15] : memref<9x1x256xf32, #tpu.memory_space<vmem>>, vector<1x1x256xf32>
    %15 = vector.shape_cast %14 : vector<1x1x256xf32> to vector<1x256xf32>
    %c8 = arith.constant 8 : index
    %c0_16 = arith.constant 0 : index
    %c0_17 = arith.constant 0 : index
    %16 = vector.load %arg8[%c8, %c0_16, %c0_17] : memref<9x1x256xf32, #tpu.memory_space<vmem>>, vector<1x1x256xf32>
    %17 = vector.shape_cast %16 : vector<1x1x256xf32> to vector<1x256xf32>
    %c0_18 = arith.constant 0 : index
    %c0_19 = arith.constant 0 : index
    %c0_20 = arith.constant 0 : index
    %18 = vector.load %arg1[%c0_18, %c0_19, %c0_20] : memref<1x4x256xf32, #tpu.memory_space<vmem>>, vector<1x4x256xf32>
    %19 = vector.shape_cast %18 : vector<1x4x256xf32> to vector<4x256xf32>
    %c17_i32 = arith.constant 17 : i32
    %20 = tpu.dynamic_rotate %19 by %c17_i32 dim 1 : vector<4x256xf32>, i32 -> vector<4x256xf32>
    %21 = vector.broadcast %1 : vector<1x256xf32> to vector<4x256xf32>
    %22 = arith.mulf %20, %21 : vector<4x256xf32>
    %c0_21 = arith.constant 0 : index
    %c0_22 = arith.constant 0 : index
    %c0_23 = arith.constant 0 : index
    %23 = vector.load %arg3[%c0_21, %c0_22, %c0_23] : memref<9x8x4xf32, #tpu.memory_space<vmem>>, vector<1x8x4xf32>
    %24 = vector.shape_cast %23 : vector<1x8x4xf32> to vector<8x4xf32>
    %cst = arith.constant dense<0.000000e+00> : vector<8x256xf32>
    %25 = tpu.matmul %24, %22, %cst {dimension_numbers = #tpu.dot_dimension_numbers<[1], [0], [0], [1], [0, 0, 1, 1], [], []>} : vector<8x4xf32>, vector<4x256xf32>, vector<8x256xf32> -> vector<8x256xf32>
    %c16_i32 = arith.constant 16 : i32
    %26 = tpu.dynamic_rotate %19 by %c16_i32 dim 1 : vector<4x256xf32>, i32 -> vector<4x256xf32>
    %27 = vector.broadcast %3 : vector<1x256xf32> to vector<4x256xf32>
    %28 = arith.mulf %26, %27 : vector<4x256xf32>
    %c1_24 = arith.constant 1 : index
    %c0_25 = arith.constant 0 : index
    %c0_26 = arith.constant 0 : index
    %29 = vector.load %arg3[%c1_24, %c0_25, %c0_26] : memref<9x8x4xf32, #tpu.memory_space<vmem>>, vector<1x8x4xf32>
    %30 = vector.shape_cast %29 : vector<1x8x4xf32> to vector<8x4xf32>
    %cst_27 = arith.constant dense<0.000000e+00> : vector<8x256xf32>
    %31 = tpu.matmul %30, %28, %cst_27 {dimension_numbers = #tpu.dot_dimension_numbers<[1], [0], [0], [1], [0, 0, 1, 1], [], []>} : vector<8x4xf32>, vector<4x256xf32>, vector<8x256xf32> -> vector<8x256xf32>
    %32 = arith.addf %25, %31 : vector<8x256xf32>
    %c15_i32 = arith.constant 15 : i32
    %33 = tpu.dynamic_rotate %19 by %c15_i32 dim 1 : vector<4x256xf32>, i32 -> vector<4x256xf32>
    %34 = vector.broadcast %5 : vector<1x256xf32> to vector<4x256xf32>
    %35 = arith.mulf %33, %34 : vector<4x256xf32>
    %c2_28 = arith.constant 2 : index
    %c0_29 = arith.constant 0 : index
    %c0_30 = arith.constant 0 : index
    %36 = vector.load %arg3[%c2_28, %c0_29, %c0_30] : memref<9x8x4xf32, #tpu.memory_space<vmem>>, vector<1x8x4xf32>
    %37 = vector.shape_cast %36 : vector<1x8x4xf32> to vector<8x4xf32>
    %cst_31 = arith.constant dense<0.000000e+00> : vector<8x256xf32>
    %38 = tpu.matmul %37, %35, %cst_31 {dimension_numbers = #tpu.dot_dimension_numbers<[1], [0], [0], [1], [0, 0, 1, 1], [], []>} : vector<8x4xf32>, vector<4x256xf32>, vector<8x256xf32> -> vector<8x256xf32>
    %39 = arith.addf %32, %38 : vector<8x256xf32>
    %c1_i32 = arith.constant 1 : i32
    %40 = tpu.dynamic_rotate %19 by %c1_i32 dim 1 : vector<4x256xf32>, i32 -> vector<4x256xf32>
    %41 = vector.broadcast %7 : vector<1x256xf32> to vector<4x256xf32>
    %42 = arith.mulf %40, %41 : vector<4x256xf32>
    %c3_32 = arith.constant 3 : index
    %c0_33 = arith.constant 0 : index
    %c0_34 = arith.constant 0 : index
    %43 = vector.load %arg3[%c3_32, %c0_33, %c0_34] : memref<9x8x4xf32, #tpu.memory_space<vmem>>, vector<1x8x4xf32>
    %44 = vector.shape_cast %43 : vector<1x8x4xf32> to vector<8x4xf32>
    %cst_35 = arith.constant dense<0.000000e+00> : vector<8x256xf32>
    %45 = tpu.matmul %44, %42, %cst_35 {dimension_numbers = #tpu.dot_dimension_numbers<[1], [0], [0], [1], [0, 0, 1, 1], [], []>} : vector<8x4xf32>, vector<4x256xf32>, vector<8x256xf32> -> vector<8x256xf32>
    %46 = arith.addf %39, %45 : vector<8x256xf32>
    %47 = vector.broadcast %9 : vector<1x256xf32> to vector<4x256xf32>
    %48 = arith.mulf %19, %47 : vector<4x256xf32>
    %c4_36 = arith.constant 4 : index
    %c0_37 = arith.constant 0 : index
    %c0_38 = arith.constant 0 : index
    %49 = vector.load %arg3[%c4_36, %c0_37, %c0_38] : memref<9x8x4xf32, #tpu.memory_space<vmem>>, vector<1x8x4xf32>
    %50 = vector.shape_cast %49 : vector<1x8x4xf32> to vector<8x4xf32>
    %cst_39 = arith.constant dense<0.000000e+00> : vector<8x256xf32>
    %51 = tpu.matmul %50, %48, %cst_39 {dimension_numbers = #tpu.dot_dimension_numbers<[1], [0], [0], [1], [0, 0, 1, 1], [], []>} : vector<8x4xf32>, vector<4x256xf32>, vector<8x256xf32> -> vector<8x256xf32>
    %52 = arith.addf %46, %51 : vector<8x256xf32>
    %c255_i32 = arith.constant 255 : i32
    %53 = tpu.dynamic_rotate %19 by %c255_i32 dim 1 : vector<4x256xf32>, i32 -> vector<4x256xf32>
    %54 = vector.broadcast %11 : vector<1x256xf32> to vector<4x256xf32>
    %55 = arith.mulf %53, %54 : vector<4x256xf32>
    %c5_40 = arith.constant 5 : index
    %c0_41 = arith.constant 0 : index
    %c0_42 = arith.constant 0 : index
    %56 = vector.load %arg3[%c5_40, %c0_41, %c0_42] : memref<9x8x4xf32, #tpu.memory_space<vmem>>, vector<1x8x4xf32>
    %57 = vector.shape_cast %56 : vector<1x8x4xf32> to vector<8x4xf32>
    %cst_43 = arith.constant dense<0.000000e+00> : vector<8x256xf32>
    %58 = tpu.matmul %57, %55, %cst_43 {dimension_numbers = #tpu.dot_dimension_numbers<[1], [0], [0], [1], [0, 0, 1, 1], [], []>} : vector<8x4xf32>, vector<4x256xf32>, vector<8x256xf32> -> vector<8x256xf32>
    %59 = arith.addf %52, %58 : vector<8x256xf32>
    %c241_i32 = arith.constant 241 : i32
    %60 = tpu.dynamic_rotate %19 by %c241_i32 dim 1 : vector<4x256xf32>, i32 -> vector<4x256xf32>
    %61 = vector.broadcast %13 : vector<1x256xf32> to vector<4x256xf32>
    %62 = arith.mulf %60, %61 : vector<4x256xf32>
    %c6_44 = arith.constant 6 : index
    %c0_45 = arith.constant 0 : index
    %c0_46 = arith.constant 0 : index
    %63 = vector.load %arg3[%c6_44, %c0_45, %c0_46] : memref<9x8x4xf32, #tpu.memory_space<vmem>>, vector<1x8x4xf32>
    %64 = vector.shape_cast %63 : vector<1x8x4xf32> to vector<8x4xf32>
    %cst_47 = arith.constant dense<0.000000e+00> : vector<8x256xf32>
    %65 = tpu.matmul %64, %62, %cst_47 {dimension_numbers = #tpu.dot_dimension_numbers<[1], [0], [0], [1], [0, 0, 1, 1], [], []>} : vector<8x4xf32>, vector<4x256xf32>, vector<8x256xf32> -> vector<8x256xf32>
    %66 = arith.addf %59, %65 : vector<8x256xf32>
    %c240_i32 = arith.constant 240 : i32
    %67 = tpu.dynamic_rotate %19 by %c240_i32 dim 1 : vector<4x256xf32>, i32 -> vector<4x256xf32>
    %68 = vector.broadcast %15 : vector<1x256xf32> to vector<4x256xf32>
    %69 = arith.mulf %67, %68 : vector<4x256xf32>
    %c7_48 = arith.constant 7 : index
    %c0_49 = arith.constant 0 : index
    %c0_50 = arith.constant 0 : index
    %70 = vector.load %arg3[%c7_48, %c0_49, %c0_50] : memref<9x8x4xf32, #tpu.memory_space<vmem>>, vector<1x8x4xf32>
    %71 = vector.shape_cast %70 : vector<1x8x4xf32> to vector<8x4xf32>
    %cst_51 = arith.constant dense<0.000000e+00> : vector<8x256xf32>
    %72 = tpu.matmul %71, %69, %cst_51 {dimension_numbers = #tpu.dot_dimension_numbers<[1], [0], [0], [1], [0, 0, 1, 1], [], []>} : vector<8x4xf32>, vector<4x256xf32>, vector<8x256xf32> -> vector<8x256xf32>
    %73 = arith.addf %66, %72 : vector<8x256xf32>
    %c239_i32 = arith.constant 239 : i32
    %74 = tpu.dynamic_rotate %19 by %c239_i32 dim 1 : vector<4x256xf32>, i32 -> vector<4x256xf32>
    %75 = vector.broadcast %17 : vector<1x256xf32> to vector<4x256xf32>
    %76 = arith.mulf %74, %75 : vector<4x256xf32>
    %c8_52 = arith.constant 8 : index
    %c0_53 = arith.constant 0 : index
    %c0_54 = arith.constant 0 : index
    %77 = vector.load %arg3[%c8_52, %c0_53, %c0_54] : memref<9x8x4xf32, #tpu.memory_space<vmem>>, vector<1x8x4xf32>
    %78 = vector.shape_cast %77 : vector<1x8x4xf32> to vector<8x4xf32>
    %cst_55 = arith.constant dense<0.000000e+00> : vector<8x256xf32>
    %79 = tpu.matmul %78, %76, %cst_55 {dimension_numbers = #tpu.dot_dimension_numbers<[1], [0], [0], [1], [0, 0, 1, 1], [], []>} : vector<8x4xf32>, vector<4x256xf32>, vector<8x256xf32> -> vector<8x256xf32>
    %80 = arith.addf %73, %79 : vector<8x256xf32>
    %c0_56 = arith.constant 0 : index
    %c0_57 = arith.constant 0 : index
    %c0_58 = arith.constant 0 : index
    %81 = vector.load %arg2[%c0_56, %c0_57, %c0_58] : memref<1x4x256xf32, #tpu.memory_space<vmem>>, vector<1x4x256xf32>
    %82 = vector.shape_cast %81 : vector<1x4x256xf32> to vector<4x256xf32>
    %c17_i32_59 = arith.constant 17 : i32
    %83 = tpu.dynamic_rotate %82 by %c17_i32_59 dim 1 : vector<4x256xf32>, i32 -> vector<4x256xf32>
    %84 = vector.broadcast %1 : vector<1x256xf32> to vector<4x256xf32>
    %85 = arith.mulf %83, %84 : vector<4x256xf32>
    %c0_60 = arith.constant 0 : index
    %c0_61 = arith.constant 0 : index
    %c0_62 = arith.constant 0 : index
    %86 = vector.load %arg4[%c0_60, %c0_61, %c0_62] : memref<9x8x4xf32, #tpu.memory_space<vmem>>, vector<1x8x4xf32>
    %87 = vector.shape_cast %86 : vector<1x8x4xf32> to vector<8x4xf32>
    %cst_63 = arith.constant dense<0.000000e+00> : vector<8x256xf32>
    %88 = tpu.matmul %87, %85, %cst_63 {dimension_numbers = #tpu.dot_dimension_numbers<[1], [0], [0], [1], [0, 0, 1, 1], [], []>} : vector<8x4xf32>, vector<4x256xf32>, vector<8x256xf32> -> vector<8x256xf32>
    %c16_i32_64 = arith.constant 16 : i32
    %89 = tpu.dynamic_rotate %82 by %c16_i32_64 dim 1 : vector<4x256xf32>, i32 -> vector<4x256xf32>
    %90 = vector.broadcast %3 : vector<1x256xf32> to vector<4x256xf32>
    %91 = arith.mulf %89, %90 : vector<4x256xf32>
    %c1_65 = arith.constant 1 : index
    %c0_66 = arith.constant 0 : index
    %c0_67 = arith.constant 0 : index
    %92 = vector.load %arg4[%c1_65, %c0_66, %c0_67] : memref<9x8x4xf32, #tpu.memory_space<vmem>>, vector<1x8x4xf32>
    %93 = vector.shape_cast %92 : vector<1x8x4xf32> to vector<8x4xf32>
    %cst_68 = arith.constant dense<0.000000e+00> : vector<8x256xf32>
    %94 = tpu.matmul %93, %91, %cst_68 {dimension_numbers = #tpu.dot_dimension_numbers<[1], [0], [0], [1], [0, 0, 1, 1], [], []>} : vector<8x4xf32>, vector<4x256xf32>, vector<8x256xf32> -> vector<8x256xf32>
    %95 = arith.addf %88, %94 : vector<8x256xf32>
    %c15_i32_69 = arith.constant 15 : i32
    %96 = tpu.dynamic_rotate %82 by %c15_i32_69 dim 1 : vector<4x256xf32>, i32 -> vector<4x256xf32>
    %97 = vector.broadcast %5 : vector<1x256xf32> to vector<4x256xf32>
    %98 = arith.mulf %96, %97 : vector<4x256xf32>
    %c2_70 = arith.constant 2 : index
    %c0_71 = arith.constant 0 : index
    %c0_72 = arith.constant 0 : index
    %99 = vector.load %arg4[%c2_70, %c0_71, %c0_72] : memref<9x8x4xf32, #tpu.memory_space<vmem>>, vector<1x8x4xf32>
    %100 = vector.shape_cast %99 : vector<1x8x4xf32> to vector<8x4xf32>
    %cst_73 = arith.constant dense<0.000000e+00> : vector<8x256xf32>
    %101 = tpu.matmul %100, %98, %cst_73 {dimension_numbers = #tpu.dot_dimension_numbers<[1], [0], [0], [1], [0, 0, 1, 1], [], []>} : vector<8x4xf32>, vector<4x256xf32>, vector<8x256xf32> -> vector<8x256xf32>
    %102 = arith.addf %95, %101 : vector<8x256xf32>
    %c1_i32_74 = arith.constant 1 : i32
    %103 = tpu.dynamic_rotate %82 by %c1_i32_74 dim 1 : vector<4x256xf32>, i32 -> vector<4x256xf32>
    %104 = vector.broadcast %7 : vector<1x256xf32> to vector<4x256xf32>
    %105 = arith.mulf %103, %104 : vector<4x256xf32>
    %c3_75 = arith.constant 3 : index
    %c0_76 = arith.constant 0 : index
    %c0_77 = arith.constant 0 : index
    %106 = vector.load %arg4[%c3_75, %c0_76, %c0_77] : memref<9x8x4xf32, #tpu.memory_space<vmem>>, vector<1x8x4xf32>
    %107 = vector.shape_cast %106 : vector<1x8x4xf32> to vector<8x4xf32>
    %cst_78 = arith.constant dense<0.000000e+00> : vector<8x256xf32>
    %108 = tpu.matmul %107, %105, %cst_78 {dimension_numbers = #tpu.dot_dimension_numbers<[1], [0], [0], [1], [0, 0, 1, 1], [], []>} : vector<8x4xf32>, vector<4x256xf32>, vector<8x256xf32> -> vector<8x256xf32>
    %109 = arith.addf %102, %108 : vector<8x256xf32>
    %110 = vector.broadcast %9 : vector<1x256xf32> to vector<4x256xf32>
    %111 = arith.mulf %82, %110 : vector<4x256xf32>
    %c4_79 = arith.constant 4 : index
    %c0_80 = arith.constant 0 : index
    %c0_81 = arith.constant 0 : index
    %112 = vector.load %arg4[%c4_79, %c0_80, %c0_81] : memref<9x8x4xf32, #tpu.memory_space<vmem>>, vector<1x8x4xf32>
    %113 = vector.shape_cast %112 : vector<1x8x4xf32> to vector<8x4xf32>
    %cst_82 = arith.constant dense<0.000000e+00> : vector<8x256xf32>
    %114 = tpu.matmul %113, %111, %cst_82 {dimension_numbers = #tpu.dot_dimension_numbers<[1], [0], [0], [1], [0, 0, 1, 1], [], []>} : vector<8x4xf32>, vector<4x256xf32>, vector<8x256xf32> -> vector<8x256xf32>
    %115 = arith.addf %109, %114 : vector<8x256xf32>
    %c255_i32_83 = arith.constant 255 : i32
    %116 = tpu.dynamic_rotate %82 by %c255_i32_83 dim 1 : vector<4x256xf32>, i32 -> vector<4x256xf32>
    %117 = vector.broadcast %11 : vector<1x256xf32> to vector<4x256xf32>
    %118 = arith.mulf %116, %117 : vector<4x256xf32>
    %c5_84 = arith.constant 5 : index
    %c0_85 = arith.constant 0 : index
    %c0_86 = arith.constant 0 : index
    %119 = vector.load %arg4[%c5_84, %c0_85, %c0_86] : memref<9x8x4xf32, #tpu.memory_space<vmem>>, vector<1x8x4xf32>
    %120 = vector.shape_cast %119 : vector<1x8x4xf32> to vector<8x4xf32>
    %cst_87 = arith.constant dense<0.000000e+00> : vector<8x256xf32>
    %121 = tpu.matmul %120, %118, %cst_87 {dimension_numbers = #tpu.dot_dimension_numbers<[1], [0], [0], [1], [0, 0, 1, 1], [], []>} : vector<8x4xf32>, vector<4x256xf32>, vector<8x256xf32> -> vector<8x256xf32>
    %122 = arith.addf %115, %121 : vector<8x256xf32>
    %c241_i32_88 = arith.constant 241 : i32
    %123 = tpu.dynamic_rotate %82 by %c241_i32_88 dim 1 : vector<4x256xf32>, i32 -> vector<4x256xf32>
    %124 = vector.broadcast %13 : vector<1x256xf32> to vector<4x256xf32>
    %125 = arith.mulf %123, %124 : vector<4x256xf32>
    %c6_89 = arith.constant 6 : index
    %c0_90 = arith.constant 0 : index
    %c0_91 = arith.constant 0 : index
    %126 = vector.load %arg4[%c6_89, %c0_90, %c0_91] : memref<9x8x4xf32, #tpu.memory_space<vmem>>, vector<1x8x4xf32>
    %127 = vector.shape_cast %126 : vector<1x8x4xf32> to vector<8x4xf32>
    %cst_92 = arith.constant dense<0.000000e+00> : vector<8x256xf32>
    %128 = tpu.matmul %127, %125, %cst_92 {dimension_numbers = #tpu.dot_dimension_numbers<[1], [0], [0], [1], [0, 0, 1, 1], [], []>} : vector<8x4xf32>, vector<4x256xf32>, vector<8x256xf32> -> vector<8x256xf32>
    %129 = arith.addf %122, %128 : vector<8x256xf32>
    %c240_i32_93 = arith.constant 240 : i32
    %130 = tpu.dynamic_rotate %82 by %c240_i32_93 dim 1 : vector<4x256xf32>, i32 -> vector<4x256xf32>
    %131 = vector.broadcast %15 : vector<1x256xf32> to vector<4x256xf32>
    %132 = arith.mulf %130, %131 : vector<4x256xf32>
    %c7_94 = arith.constant 7 : index
    %c0_95 = arith.constant 0 : index
    %c0_96 = arith.constant 0 : index
    %133 = vector.load %arg4[%c7_94, %c0_95, %c0_96] : memref<9x8x4xf32, #tpu.memory_space<vmem>>, vector<1x8x4xf32>
    %134 = vector.shape_cast %133 : vector<1x8x4xf32> to vector<8x4xf32>
    %cst_97 = arith.constant dense<0.000000e+00> : vector<8x256xf32>
    %135 = tpu.matmul %134, %132, %cst_97 {dimension_numbers = #tpu.dot_dimension_numbers<[1], [0], [0], [1], [0, 0, 1, 1], [], []>} : vector<8x4xf32>, vector<4x256xf32>, vector<8x256xf32> -> vector<8x256xf32>
    %136 = arith.addf %129, %135 : vector<8x256xf32>
    %c239_i32_98 = arith.constant 239 : i32
    %137 = tpu.dynamic_rotate %82 by %c239_i32_98 dim 1 : vector<4x256xf32>, i32 -> vector<4x256xf32>
    %138 = vector.broadcast %17 : vector<1x256xf32> to vector<4x256xf32>
    %139 = arith.mulf %137, %138 : vector<4x256xf32>
    %c8_99 = arith.constant 8 : index
    %c0_100 = arith.constant 0 : index
    %c0_101 = arith.constant 0 : index
    %140 = vector.load %arg4[%c8_99, %c0_100, %c0_101] : memref<9x8x4xf32, #tpu.memory_space<vmem>>, vector<1x8x4xf32>
    %141 = vector.shape_cast %140 : vector<1x8x4xf32> to vector<8x4xf32>
    %cst_102 = arith.constant dense<0.000000e+00> : vector<8x256xf32>
    %142 = tpu.matmul %141, %139, %cst_102 {dimension_numbers = #tpu.dot_dimension_numbers<[1], [0], [0], [1], [0, 0, 1, 1], [], []>} : vector<8x4xf32>, vector<4x256xf32>, vector<8x256xf32> -> vector<8x256xf32>
    %143 = arith.addf %136, %142 : vector<8x256xf32>
    %144 = arith.addf %80, %143 : vector<8x256xf32>
    %c0_103 = arith.constant 0 : index
    %c0_104 = arith.constant 0 : index
    %145 = vector.load %arg5[%c0_103, %c0_104] : memref<8x1xf32, #tpu.memory_space<vmem>>, vector<8x1xf32>
    %146 = vector.broadcast %145 : vector<8x1xf32> to vector<8x256xf32>
    %147 = arith.addf %144, %146 : vector<8x256xf32>
    %cst_105 = arith.constant 0.000000e+00 : f32
    %148 = vector.broadcast %cst_105 : f32 to vector<8x256xf32>
    %149 = arith.maximumf %147, %148 : vector<8x256xf32>
    %c17_i32_106 = arith.constant 17 : i32
    %150 = tpu.dynamic_rotate %149 by %c17_i32_106 dim 1 : vector<8x256xf32>, i32 -> vector<8x256xf32>
    %151 = vector.broadcast %1 : vector<1x256xf32> to vector<8x256xf32>
    %152 = arith.mulf %150, %151 : vector<8x256xf32>
    %c0_107 = arith.constant 0 : index
    %c0_108 = arith.constant 0 : index
    %c0_109 = arith.constant 0 : index
    %153 = vector.load %arg6[%c0_107, %c0_108, %c0_109] : memref<9x8x8xf32, #tpu.memory_space<vmem>>, vector<1x8x8xf32>
    %154 = vector.shape_cast %153 : vector<1x8x8xf32> to vector<8x8xf32>
    %cst_110 = arith.constant dense<0.000000e+00> : vector<8x256xf32>
    %155 = tpu.matmul %154, %152, %cst_110 {dimension_numbers = #tpu.dot_dimension_numbers<[1], [0], [0], [1], [0, 0, 1, 1], [], []>} : vector<8x8xf32>, vector<8x256xf32>, vector<8x256xf32> -> vector<8x256xf32>
    %c16_i32_111 = arith.constant 16 : i32
    %156 = tpu.dynamic_rotate %149 by %c16_i32_111 dim 1 : vector<8x256xf32>, i32 -> vector<8x256xf32>
    %157 = vector.broadcast %3 : vector<1x256xf32> to vector<8x256xf32>
    %158 = arith.mulf %156, %157 : vector<8x256xf32>
    %c1_112 = arith.constant 1 : index
    %c0_113 = arith.constant 0 : index
    %c0_114 = arith.constant 0 : index
    %159 = vector.load %arg6[%c1_112, %c0_113, %c0_114] : memref<9x8x8xf32, #tpu.memory_space<vmem>>, vector<1x8x8xf32>
    %160 = vector.shape_cast %159 : vector<1x8x8xf32> to vector<8x8xf32>
    %cst_115 = arith.constant dense<0.000000e+00> : vector<8x256xf32>
    %161 = tpu.matmul %160, %158, %cst_115 {dimension_numbers = #tpu.dot_dimension_numbers<[1], [0], [0], [1], [0, 0, 1, 1], [], []>} : vector<8x8xf32>, vector<8x256xf32>, vector<8x256xf32> -> vector<8x256xf32>
    %162 = arith.addf %155, %161 : vector<8x256xf32>
    %c15_i32_116 = arith.constant 15 : i32
    %163 = tpu.dynamic_rotate %149 by %c15_i32_116 dim 1 : vector<8x256xf32>, i32 -> vector<8x256xf32>
    %164 = vector.broadcast %5 : vector<1x256xf32> to vector<8x256xf32>
    %165 = arith.mulf %163, %164 : vector<8x256xf32>
    %c2_117 = arith.constant 2 : index
    %c0_118 = arith.constant 0 : index
    %c0_119 = arith.constant 0 : index
    %166 = vector.load %arg6[%c2_117, %c0_118, %c0_119] : memref<9x8x8xf32, #tpu.memory_space<vmem>>, vector<1x8x8xf32>
    %167 = vector.shape_cast %166 : vector<1x8x8xf32> to vector<8x8xf32>
    %cst_120 = arith.constant dense<0.000000e+00> : vector<8x256xf32>
    %168 = tpu.matmul %167, %165, %cst_120 {dimension_numbers = #tpu.dot_dimension_numbers<[1], [0], [0], [1], [0, 0, 1, 1], [], []>} : vector<8x8xf32>, vector<8x256xf32>, vector<8x256xf32> -> vector<8x256xf32>
    %169 = arith.addf %162, %168 : vector<8x256xf32>
    %c1_i32_121 = arith.constant 1 : i32
    %170 = tpu.dynamic_rotate %149 by %c1_i32_121 dim 1 : vector<8x256xf32>, i32 -> vector<8x256xf32>
    %171 = vector.broadcast %7 : vector<1x256xf32> to vector<8x256xf32>
    %172 = arith.mulf %170, %171 : vector<8x256xf32>
    %c3_122 = arith.constant 3 : index
    %c0_123 = arith.constant 0 : index
    %c0_124 = arith.constant 0 : index
    %173 = vector.load %arg6[%c3_122, %c0_123, %c0_124] : memref<9x8x8xf32, #tpu.memory_space<vmem>>, vector<1x8x8xf32>
    %174 = vector.shape_cast %173 : vector<1x8x8xf32> to vector<8x8xf32>
    %cst_125 = arith.constant dense<0.000000e+00> : vector<8x256xf32>
    %175 = tpu.matmul %174, %172, %cst_125 {dimension_numbers = #tpu.dot_dimension_numbers<[1], [0], [0], [1], [0, 0, 1, 1], [], []>} : vector<8x8xf32>, vector<8x256xf32>, vector<8x256xf32> -> vector<8x256xf32>
    %176 = arith.addf %169, %175 : vector<8x256xf32>
    %177 = vector.broadcast %9 : vector<1x256xf32> to vector<8x256xf32>
    %178 = arith.mulf %149, %177 : vector<8x256xf32>
    %c4_126 = arith.constant 4 : index
    %c0_127 = arith.constant 0 : index
    %c0_128 = arith.constant 0 : index
    %179 = vector.load %arg6[%c4_126, %c0_127, %c0_128] : memref<9x8x8xf32, #tpu.memory_space<vmem>>, vector<1x8x8xf32>
    %180 = vector.shape_cast %179 : vector<1x8x8xf32> to vector<8x8xf32>
    %cst_129 = arith.constant dense<0.000000e+00> : vector<8x256xf32>
    %181 = tpu.matmul %180, %178, %cst_129 {dimension_numbers = #tpu.dot_dimension_numbers<[1], [0], [0], [1], [0, 0, 1, 1], [], []>} : vector<8x8xf32>, vector<8x256xf32>, vector<8x256xf32> -> vector<8x256xf32>
    %182 = arith.addf %176, %181 : vector<8x256xf32>
    %c255_i32_130 = arith.constant 255 : i32
    %183 = tpu.dynamic_rotate %149 by %c255_i32_130 dim 1 : vector<8x256xf32>, i32 -> vector<8x256xf32>
    %184 = vector.broadcast %11 : vector<1x256xf32> to vector<8x256xf32>
    %185 = arith.mulf %183, %184 : vector<8x256xf32>
    %c5_131 = arith.constant 5 : index
    %c0_132 = arith.constant 0 : index
    %c0_133 = arith.constant 0 : index
    %186 = vector.load %arg6[%c5_131, %c0_132, %c0_133] : memref<9x8x8xf32, #tpu.memory_space<vmem>>, vector<1x8x8xf32>
    %187 = vector.shape_cast %186 : vector<1x8x8xf32> to vector<8x8xf32>
    %cst_134 = arith.constant dense<0.000000e+00> : vector<8x256xf32>
    %188 = tpu.matmul %187, %185, %cst_134 {dimension_numbers = #tpu.dot_dimension_numbers<[1], [0], [0], [1], [0, 0, 1, 1], [], []>} : vector<8x8xf32>, vector<8x256xf32>, vector<8x256xf32> -> vector<8x256xf32>
    %189 = arith.addf %182, %188 : vector<8x256xf32>
    %c241_i32_135 = arith.constant 241 : i32
    %190 = tpu.dynamic_rotate %149 by %c241_i32_135 dim 1 : vector<8x256xf32>, i32 -> vector<8x256xf32>
    %191 = vector.broadcast %13 : vector<1x256xf32> to vector<8x256xf32>
    %192 = arith.mulf %190, %191 : vector<8x256xf32>
    %c6_136 = arith.constant 6 : index
    %c0_137 = arith.constant 0 : index
    %c0_138 = arith.constant 0 : index
    %193 = vector.load %arg6[%c6_136, %c0_137, %c0_138] : memref<9x8x8xf32, #tpu.memory_space<vmem>>, vector<1x8x8xf32>
    %194 = vector.shape_cast %193 : vector<1x8x8xf32> to vector<8x8xf32>
    %cst_139 = arith.constant dense<0.000000e+00> : vector<8x256xf32>
    %195 = tpu.matmul %194, %192, %cst_139 {dimension_numbers = #tpu.dot_dimension_numbers<[1], [0], [0], [1], [0, 0, 1, 1], [], []>} : vector<8x8xf32>, vector<8x256xf32>, vector<8x256xf32> -> vector<8x256xf32>
    %196 = arith.addf %189, %195 : vector<8x256xf32>
    %c240_i32_140 = arith.constant 240 : i32
    %197 = tpu.dynamic_rotate %149 by %c240_i32_140 dim 1 : vector<8x256xf32>, i32 -> vector<8x256xf32>
    %198 = vector.broadcast %15 : vector<1x256xf32> to vector<8x256xf32>
    %199 = arith.mulf %197, %198 : vector<8x256xf32>
    %c7_141 = arith.constant 7 : index
    %c0_142 = arith.constant 0 : index
    %c0_143 = arith.constant 0 : index
    %200 = vector.load %arg6[%c7_141, %c0_142, %c0_143] : memref<9x8x8xf32, #tpu.memory_space<vmem>>, vector<1x8x8xf32>
    %201 = vector.shape_cast %200 : vector<1x8x8xf32> to vector<8x8xf32>
    %cst_144 = arith.constant dense<0.000000e+00> : vector<8x256xf32>
    %202 = tpu.matmul %201, %199, %cst_144 {dimension_numbers = #tpu.dot_dimension_numbers<[1], [0], [0], [1], [0, 0, 1, 1], [], []>} : vector<8x8xf32>, vector<8x256xf32>, vector<8x256xf32> -> vector<8x256xf32>
    %203 = arith.addf %196, %202 : vector<8x256xf32>
    %c239_i32_145 = arith.constant 239 : i32
    %204 = tpu.dynamic_rotate %149 by %c239_i32_145 dim 1 : vector<8x256xf32>, i32 -> vector<8x256xf32>
    %205 = vector.broadcast %17 : vector<1x256xf32> to vector<8x256xf32>
    %206 = arith.mulf %204, %205 : vector<8x256xf32>
    %c8_146 = arith.constant 8 : index
    %c0_147 = arith.constant 0 : index
    %c0_148 = arith.constant 0 : index
    %207 = vector.load %arg6[%c8_146, %c0_147, %c0_148] : memref<9x8x8xf32, #tpu.memory_space<vmem>>, vector<1x8x8xf32>
    %208 = vector.shape_cast %207 : vector<1x8x8xf32> to vector<8x8xf32>
    %cst_149 = arith.constant dense<0.000000e+00> : vector<8x256xf32>
    %209 = tpu.matmul %208, %206, %cst_149 {dimension_numbers = #tpu.dot_dimension_numbers<[1], [0], [0], [1], [0, 0, 1, 1], [], []>} : vector<8x8xf32>, vector<8x256xf32>, vector<8x256xf32> -> vector<8x256xf32>
    %210 = arith.addf %203, %209 : vector<8x256xf32>
    %c0_150 = arith.constant 0 : index
    %c0_151 = arith.constant 0 : index
    %211 = vector.load %arg7[%c0_150, %c0_151] : memref<8x1xf32, #tpu.memory_space<vmem>>, vector<8x1xf32>
    %212 = vector.broadcast %211 : vector<8x1xf32> to vector<8x256xf32>
    %213 = arith.addf %210, %212 : vector<8x256xf32>
    %cst_152 = arith.constant 0.000000e+00 : f32
    %214 = vector.broadcast %cst_152 : f32 to vector<8x256xf32>
    %215 = arith.maximumf %213, %214 : vector<8x256xf32>
    %c0_153 = arith.constant 0 : index
    %c0_154 = arith.constant 0 : index
    %216 = vector.load %arg9[%c0_153, %c0_154] : memref<256x1024xf32, #tpu.memory_space<vmem>>, vector<256x1024xf32>
    %cst_155 = arith.constant dense<0.000000e+00> : vector<8x1024xf32>
    %217 = tpu.matmul %215, %216, %cst_155 {dimension_numbers = #tpu.dot_dimension_numbers<[1], [0], [0], [1], [0, 0, 1, 1], [], []>} : vector<8x256xf32>, vector<256x1024xf32>, vector<8x1024xf32> -> vector<8x1024xf32>
    %c0_156 = arith.constant 0 : index
    %c0_157 = arith.constant 0 : index
    %c0_158 = arith.constant 0 : index
    %218 = vector.load %arg10[%c0_156, %c0_157, %c0_158] : memref<1x8x1024xf32, #tpu.memory_space<vmem>>, vector<1x8x1024xf32>
    %219 = vector.shape_cast %218 : vector<1x8x1024xf32> to vector<8x1024xf32>
    %220 = vector.shape_cast %217 : vector<8x1024xf32> to vector<1x8x1024xf32>
    tpu.vector_store %arg10[%c0_156, %c0_157, %c0_158], %220 {strides = array<i32>} : memref<1x8x1024xf32, #tpu.memory_space<vmem>>, vector<1x8x1024xf32>,
    return
  }
  func.func @transform_0(%arg0: i32) -> (i32, i32, i32) {
    %c0_i32 = arith.constant 0 : i32
    %c0_i32_0 = arith.constant 0 : i32
    %c0_i32_1 = arith.constant 0 : i32
    return %arg0, %c0_i32, %c0_i32_0 : i32, i32, i32
  }
  func.func @transform_1(%arg0: i32) -> (i32, i32, i32) {
    %c0_i32 = arith.constant 0 : i32
    %c0_i32_0 = arith.constant 0 : i32
    %c0_i32_1 = arith.constant 0 : i32
    return %arg0, %c0_i32, %c0_i32_0 : i32, i32, i32
  }
  func.func @transform_2(%arg0: i32) -> (i32, i32, i32) {
    %c0_i32 = arith.constant 0 : i32
    %c0_i32_0 = arith.constant 0 : i32
    %c0_i32_1 = arith.constant 0 : i32
    %c0_i32_2 = arith.constant 0 : i32
    return %c0_i32, %c0_i32_0, %c0_i32_1 : i32, i32, i32
  }
  func.func @transform_3(%arg0: i32) -> (i32, i32, i32) {
    %c0_i32 = arith.constant 0 : i32
    %c0_i32_0 = arith.constant 0 : i32
    %c0_i32_1 = arith.constant 0 : i32
    %c0_i32_2 = arith.constant 0 : i32
    return %c0_i32, %c0_i32_0, %c0_i32_1 : i32, i32, i32
  }
  func.func @transform_4(%arg0: i32) -> (i32, i32) {
    %c0_i32 = arith.constant 0 : i32
    %c0_i32_0 = arith.constant 0 : i32
    %c0_i32_1 = arith.constant 0 : i32
    return %c0_i32, %c0_i32_0 : i32, i32
  }
  func.func @transform_5(%arg0: i32) -> (i32, i32, i32) {
    %c0_i32 = arith.constant 0 : i32
    %c0_i32_0 = arith.constant 0 : i32
    %c0_i32_1 = arith.constant 0 : i32
    %c0_i32_2 = arith.constant 0 : i32
    return %c0_i32, %c0_i32_0, %c0_i32_1 : i32, i32, i32
  }
  func.func @transform_6(%arg0: i32) -> (i32, i32) {
    %c0_i32 = arith.constant 0 : i32
    %c0_i32_0 = arith.constant 0 : i32
    %c0_i32_1 = arith.constant 0 : i32
    return %c0_i32, %c0_i32_0 : i32, i32
  }
  func.func @transform_7(%arg0: i32) -> (i32, i32, i32) {
    %c0_i32 = arith.constant 0 : i32
    %c0_i32_0 = arith.constant 0 : i32
    %c0_i32_1 = arith.constant 0 : i32
    %c0_i32_2 = arith.constant 0 : i32
    return %c0_i32, %c0_i32_0, %c0_i32_1 : i32, i32, i32
  }
  func.func @transform_8(%arg0: i32) -> (i32, i32) {
    %c0_i32 = arith.constant 0 : i32
    %c0_i32_0 = arith.constant 0 : i32
    %c0_i32_1 = arith.constant 0 : i32
    return %c0_i32, %c0_i32_0 : i32, i32
  }
  func.func @transform_9(%arg0: i32) -> (i32, i32, i32) {
    %c0_i32 = arith.constant 0 : i32
    %c0_i32_0 = arith.constant 0 : i32
    %c0_i32_1 = arith.constant 0 : i32
    return %arg0, %c0_i32, %c0_i32_0 : i32, i32, i32
  }
}

</mosaic_0001>

<bundles_post_ra>
// kernel: unet_up_forward.1
= control target key start
LH: loop header
LB: loop body
LE: loop exit
PB: predicated region body
PF: predicated region fallthrough
CT: control target
= control target key end

     0   :  { %14 = vsyncpa [#allocation3], 0  ;;  %s4107_s30 = smov 0   ;;  %s4693_s0 = inlined_call_operand.vmem [shape: f32[2,4,256], index: 0, kind: input, shape index: {}]   ;;  %s4694_s1 = inlined_call_operand.vmem [shape: f32[2,4,256], index: 1, kind: input, shape index: {}]   ;;  %s4695_s2 = inlined_call_operand.vmem [shape: f32[9,8,4], index: 2, kind: input, shape index: {}]   ;;  %s4696_s3 = inlined_call_operand.vmem [shape: f32[9,8,4], index: 3, kind: input, shape index: {}]   ;;  %s4697_s4 = inlined_call_operand.vmem [shape: f32[8,1], index: 4, kind: input, shape index: {}]   ;;  %s4698_s5 = inlined_call_operand.vmem [shape: f32[9,8,8], index: 5, kind: input, shape index: {}]   ;;  %s4699_s6 = inlined_call_operand.vmem [shape: f32[8,1], index: 6, kind: input, shape index: {}]   ;;  %s4700_s7 = inlined_call_operand.vmem [shape: f32[9,1,256], index: 7, kind: input, shape index: {}]   ;;  %s4701_s8 = inlined_call_operand.hbm [shape: f32[256,1024], index: 8, kind: input, shape index: {}]   ;;  %s4702_s9 = inlined_call_operand.vmem [shape: f32[2,8,1024], index: 9, kind: output, shape index: {}]  }
   0x1 LB: > { %s4113_s10 = sadd.s32 4294967295, %s4042_s30   ;;  %p3553_p0 = scmp.ge.s32.totalorder %s4042_s30, 1  ;;  %s4042_s30 = sphi %s4107_s30, %s20_s30  }
   0x2   : > { %p250_p1 = scmp.lt.s32.totalorder %s4042_s30, 3  ;;  %s4044_s11 = smov [#allocation2]  }
   0x3   : > { %s280_s12 = sshll.u32 %s4044_s11, 4  ;;  %p4703_p3 = scmp.eq.s32.totalorder %s4113_s10, 0  ;;  %s281_s12 = int_to_ptr.vmem [resolvable:$true] %s280_s12 }
   0x4   : > { %p4117_p2 = pnand %p3553_p0, %p250_p1  ;;  %s4004_s17 = scalar_lea.hbm %s4701_s8, 32768 }
   0x5   : > { %p4005_p6 = scmp.ne.s32.totalorder %s4701_s8, %s4004_s17  ;;  %p4011_p10 = scmp.lt.u32.totalorder %s4004_s17, %s4701_s8 }
   0x6   : > { %s4705_s13 = scalar_select %p4117_p2, 1, 0 }
   0x7   : > { %p3974_p4 = pneg %p4117_p2 }
   0x9   : > { %p4126_p5 = pnand %p4703_p3, %p3974_p4 }
   0xb   : > { %p4006_p7 = pneg %p4126_p5 }
   0xd   : > { %p4007_p8 = pnand %p4006_p7, %p4005_p6 }
   0xf   : > { %p4008_p9 = pneg %p4007_p8 }
  0x11   : > { %p4013_p11 = pnand %p4011_p10, %p4008_p9 }
  0x13   : > { %4016 = shalt.err (!%p4013_p11)
}
  0x14   : > { %s4017_s22 = scalar_lea.vmem %s281_s12, 32768  ;;  %p4025_p1 = scmp.lt.s32.totalorder %s281_s12, %s281_s12 }
  0x15   : > { %p4018_p12 = scmp.ne.s32.totalorder %s281_s12, %s4017_s22  ;;  %p4026_p4 = scmp.lt.s32.totalorder %s4017_s22, %s4017_s22 }
  0x17   : > { %p4020_p13 = pnand %p4018_p12, %p4006_p7  ;;  %p4027_p3 = por %p4026_p4, %p4025_p1 }
  0x19   : > { %p4021_p0 = pneg %p4020_p13 }
  0x1b   : > { %p4028_p2 = pnand %p4027_p3, %p4021_p0 }
  0x1d   : > { %4031 = shalt.err (!%p4028_p2)
}
  0x1e   : > { %s4045_s23 = smov 1024   ;;  %s4046_s24 = smov 64  }
  0x1f   : > { %3977 = dma.hbm_to_vmem [thread:$0]  (!%p4126_p5), %s4701_s8, 32768, %s281_s12, [#allocation3], %s4045_s23, %s4045_s23, %s4046_s24  }
  0x20   : > { %p4707_p6 = scmp.ne.s32.totalorder %s4705_s13, 0 }
  0x21   : > { %p4708_p8 = scmp.eq.s32.totalorder (!%p4707_p6), %s4113_s10, 0 }
  0x22   : > { %312 = sbr.rel (%p4707_p6) target bundleno = 1170 (0x492), region = 56 }
  0x29   : > { %4037 = dma.done.wait (%p4708_p8), [#allocation3], 32768   ;;  %p4709_p7 = pmov %p4708_p8 }
  0x2a   : > { %p353_p2 = scmp.lt.s32.totalorder %s4113_s10, 1  ;;  %v393_v0 = vlaneseq  ;;  %v4047_v1 = vmov 0.0   ;;  %v3567_v6 = vld [vmem:[%s4700_s7 + $0x8] sm:$0x3]  ;;  %s4048_s14 = smov 127   ;;  %vm438_vm0 = vcmask 1043456  }
  0x2b   : > { %4039 = vsyncadd (%p4709_p7), [#allocation3], 4294934528  ;;  %891 = vmatprep.mubr.f32.mxu0 %v4047_v1  ;;  %509 = vmatprep.mubr.f32.mxu1 %v4047_v1  ;;  %s4049_s15 = smov 113   ;;  %s4050_s19 = smov 112   ;;  %vm434_vm1 = vcmask 31744   ;;  %v3587_v15 = vld [vmem:[%s4695_s2 + $0x20] sm:$0xff] }
  0x2c   : > { %s4711_s10 = smov (!%p353_p2, %s4113_s10), 1  ;;  %v400_v2 = vshrl.u32 %v393_v0, 7  ;;  %s4051_s22 = smov 111   ;;  %v2138_v17 = vld [vmem:[%s4697_s4] sm:$0xff]  ;;  %v4056_v18 = vmov 0   ;;  %v4226_v19 = vand.u32 127, %v393_v0 }
  0x2d   : > { %s3661_s27 = sshll.u32 %s4711_s10, 3  ;;  %s4052_s23 = smov 16   ;;  %4001 = vset.pattern.permute.xlu0 %v4056_v18  ;;  %v3568_v20 = vld [vmem:[%s4700_s7 + $0xa] sm:$0x3]  ;;  %v3569_v21 = vld [vmem:[%s4700_s7 + $0xc] sm:$0x3] }
  0x2e   : > { %v4160_v3 = vsub.s32 0, %v400_v2  ;;  %s357_s11 = scalar_lea.vmem %s4693_s0, %s3661_s27  ;;  %v4165_v4 = vsub.s32 1, %v400_v2  ;;  %s362_s18 = scalar_lea.vmem %s4694_s1, %s3661_s27  ;;  %vm904_vm2 = vcmp.lt.s32.totalorder %v4226_v19, 127  ;;  %vm1008_vm3 = vcmp.lt.s32.totalorder %v4226_v19, 113  ;;  %v3570_v28 = vld [vmem:[%s4700_s7 + $0xe] sm:$0x3] }
  0x2f   : > { %v385_v5 = vld [vmem:[%s357_s11] sm:$0xff]  ;;  %s4053_s24 = smov 17   ;;  %s4054_s25 = smov 15   ;;  %vm1112_vm4 = vcmp.lt.s32.totalorder %v4226_v19, 112  ;;  %v3591_v40 = vld [vmem:[%s4695_s2 + $0x28] sm:$0xff]  ;;  %vm1216_vm5 = vcmp.lt.s32.totalorder %v4226_v19, 111 }
  0x30   : > { %900 = vrot.lane.b32.xlu0 %v385_v5, %s4048_s14  ;;  %1004 = vrot.lane.b32.xlu1 %v385_v5, %s4049_s15  ;;  %v387_v7 = vcombine.high %v385_v5, %v385_v5  ;;  %v4173_v8 = vrot.slane %v3567_v6, %v4160_v3  ;;  %v4179_v9 = vrot.slane %v3567_v6, %v4165_v4  ;;  %v1316_v11 = vld [vmem:[%s362_s18] sm:$0xff]  ;;  %s4055_s26 = smov 1   ;;  %v3571_v44 = vld [vmem:[%s4700_s7 + $0x10] sm:$0x3]  ;;  %vm416_vm6 = vcmp.lt.s32.totalorder %v4226_v19, 16 }
  0x31   : > { %v1318_v16 = vcombine.high %v1316_v11, %v1316_v11  ;;  %v4236_v24 = vrot.slane %v3568_v20, %v4160_v3  ;;  %v4239_v25 = vrot.slane %v3568_v20, %v4165_v4  ;;  %v4243_v26 = vrot.slane %v3569_v21, %v4165_v4  ;;  %v3595_v52 = vld [vmem:[%s4695_s2 + $0x30] sm:$0xff]  ;;  %v3564_v57 = vld [vmem:[%s4700_s7 + $0x2] sm:$0x3]  ;;  %v3599_v0 = vld [vmem:[%s4695_s2 + $0x38] sm:$0xff] }
  0x32   : > { %v813_v10 = vcombine.low %v4173_v8, %v4179_v9  ;;  %v4246_v27 = vrot.slane %v3569_v21, %v4160_v3  ;;  %v4264_v38 = vrot.slane %v3570_v28, %v4165_v4  ;;  %v4284_v46 = vrot.slane %v3570_v28, %v4160_v3  ;;  %v3603_v18 = vld [vmem:[%s4695_s2 + $0x40] sm:$0xff] }
  0x33   : > { %v4290_v50 = vrot.slane %v3571_v44, %v4165_v4  ;;  %v4307_v58 = vrot.slane %v3571_v44, %v4160_v3  ;;  %v4313_v60 = vrot.slane %v3564_v57, %v4165_v4  ;;  %vm395_vm7 = vcmp.lt.s32.totalorder %v4226_v19, 17  ;;  %v3565_v28 = vld [vmem:[%s4700_s7 + $0x4] sm:$0x3] }
  0x34   : > { %902 = vrot.lane.b32.xlu0 %v387_v7, %s4048_s14  ;;  %1006 = vrot.lane.b32.xlu1 %v387_v7, %s4049_s15  ;;  %v815_v12 = vmul.f32 %v813_v10, %v385_v5  ;;  %v4185_v13 = vmul.f32 %v1316_v11, %v813_v10  ;;  %v368_v10 = vld [vmem:[%s4700_s7] sm:$0x3]  ;;  %vm600_vm8 = vcmp.lt.s32.totalorder %v4226_v19, 15  ;;  %vm704_vm9 = vcmp.lt.s32.totalorder %v4226_v19, 1 }
  0x35   : > { %vm2167_vm10 = vcmask 64512   ;;  %v3657_v19 = vld [vmem:[%s4698_s5 + $0x40] sm:$0xff] }
  0x36   : > { %v819_v14 = vcombine.high %v815_v12, %v815_v12 }
  0x38   : > { %1110 = vrot.lane.b32.xlu1 %v387_v7, %s4050_s19  ;;  %1108 = vrot.lane.b32.xlu0 %v385_v5, %s4050_s19 }
  0x39   : > { %3588 = vmatprep.subr.msk.mxu0 %vm438_vm0, %v819_v14  ;;  %v4336_v14 = vrot.slane %v368_v10, %v4165_v4 }
  0x3a   : > { %3589 = vmatpush1.msk.msra.mxu0 %vm438_vm0, %v815_v12 }
  0x3b   : > { %3590 = vmatmul.mubr.msk.f32.vlgmr.msra.gmra.mrb[0].mxu0 %vm434_vm1, %v3587_v15 }
  0x3c   : > { %1214 = vrot.lane.b32.xlu1 %v387_v7, %s4051_s22  ;;  %1212 = vrot.lane.b32.xlu0 %v385_v5, %s4051_s22 }
  0x3d   : > { %995 = vmatprep.mubr.f32.mxu0 %v4047_v1 }
  0x40   : > { %1331 = vrot.lane.b32.xlu1 %v1318_v16, %s4052_s23  ;;  %1329 = vrot.lane.b32.xlu0 %v1316_v11, %s4052_s23 }
  0x44   : > { %1322 = vrot.lane.b32.xlu1 %v1318_v16, %s4053_s24  ;;  %1320 = vrot.lane.b32.xlu0 %v1316_v11, %s4053_s24 }
  0x48   : > { %1501 = vrot.lane.b32.xlu1 %v1318_v16, %s4054_s25  ;;  %1499 = vrot.lane.b32.xlu0 %v1316_v11, %s4054_s25 }
  0x4c   : > { %1593 = vrot.lane.b32.xlu1 %v1318_v16, %s4055_s26  ;;  %1591 = vrot.lane.b32.xlu0 %v1316_v11, %s4055_s26 }
  0x50   : > { %414 = vrot.lane.b32.xlu1 %v387_v7, %s4052_s23  ;;  %412 = vrot.lane.b32.xlu0 %v385_v5, %s4052_s23 }
  0x54   : > { %1770 = vrot.lane.b32.xlu1 %v1318_v16, %s4048_s14  ;;  %1768 = vrot.lane.b32.xlu0 %v1316_v11, %s4048_s14 }
  0x58   : > { %391 = vrot.lane.b32.xlu1 %v387_v7, %s4053_s24  ;;  %389 = vrot.lane.b32.xlu0 %v385_v5, %s4053_s24 }
  0x5c   : > { %1862 = vrot.lane.b32.xlu1 %v1318_v16, %s4049_s15  ;;  %1860 = vrot.lane.b32.xlu0 %v1316_v11, %s4049_s15 }
  0x60   : > { %598 = vrot.lane.b32.xlu1 %v387_v7, %s4054_s25  ;;  %596 = vrot.lane.b32.xlu0 %v385_v5, %s4054_s25 }
  0x64   : > { %1954 = vrot.lane.b32.xlu1 %v1318_v16, %s4050_s19  ;;  %1952 = vrot.lane.b32.xlu0 %v1316_v11, %s4050_s19 }
  0x68   : > { %702 = vrot.lane.b32.xlu1 %v387_v7, %s4055_s26  ;;  %700 = vrot.lane.b32.xlu0 %v385_v5, %s4055_s26 }
  0x6c   : > { %2046 = vrot.lane.b32.xlu1 %v1318_v16, %s4051_s22  ;;  %2044 = vrot.lane.b32.xlu0 %v1316_v11, %s4051_s22  ;;  %v4330_v11 = vrot.slane %v3564_v57, %v4160_v3 }
  0x70   : > { %2141 = vperm.xlu0 %4001, %v2138_v17  }
  0xa2   : > { %v901_v22 = vpop.permute.xlu0 %900  ;;  %v1005_v23 = vpop.permute.xlu1 %1004 }
  0xa6   : > { %v903_v29 = vpop.permute.xlu0 %902  ;;  %v1007_v30 = vpop.permute.xlu1 %1006 }
  0xa7   : > { %v905_v31 = vsel %vm904_vm2, %v901_v22, %v903_v29  ;;  %v906_v32 = vsel %vm904_vm2, %v903_v29, %v901_v22  ;;  %v1009_v33 = vsel %vm1008_vm3, %v1005_v23, %v1007_v30  ;;  %v1010_v34 = vsel %vm1008_vm3, %v1007_v30, %v1005_v23 }
  0xa8   : > { %v918_v35 = vmul.f32 %v4236_v24, %v905_v31  ;;  %v919_v36 = vmul.f32 %v4239_v25, %v906_v32  ;;  %v1023_v37 = vmul.f32 %v4243_v26, %v1010_v34  ;;  %v1022_v39 = vmul.f32 %v4246_v27, %v1009_v33  ;;  %v3572_v34 = vld [vmem:[%s4695_s2 + $0x8] sm:$0xff] }
  0xa9   : > { %v4363_v33 = vrot.slane %v368_v10, %v4160_v3 }
  0xaa   : > { %3592 = vmatprep.subr.msk.mxu0 %vm438_vm0, %v919_v36  ;;  %v1111_v41 = vpop.permute.xlu1 %1110  ;;  %v1109_v42 = vpop.permute.xlu0 %1108  ;;  %v4371_v36 = vrot.slane %v3565_v28, %v4165_v4 }
  0xab   : > { %3593 = vmatpush1.msk.msra.mxu0 %vm438_vm0, %v918_v35  ;;  %v1114_v43 = vsel %vm1112_vm4, %v1111_v41, %v1109_v42  ;;  %v1113_v47 = vsel %vm1112_vm4, %v1109_v42, %v1111_v41  ;;  %v3607_v41 = vld [vmem:[%s4696_s3 + $0x8] sm:$0xff] }
  0xac   : > { %3594 = vmatmul.mubr.msk.f32.vlgmr.msra.gmra.mrb[0].mxu0 %vm434_vm1, %v3591_v40  ;;  %3596 = vmatprep.subr.msk.mxu0 %vm438_vm0, %v1023_v37  ;;  %v1127_v45 = vmul.f32 %v4264_v38, %v1114_v43  ;;  %v1126_v53 = vmul.f32 %v4284_v46, %v1113_v47  ;;  %v3566_v47 = vld [vmem:[%s4700_s7 + $0x6] sm:$0x3] }
  0xad   : > { %3597 = vmatpush1.msk.msra.mxu0 %vm438_vm0, %v1022_v39  ;;  %1099 = vmatprep.mubr.f32.mxu0 %v4047_v1 }
  0xae   : > { %3600 = vmatprep.subr.msk.mxu0 %vm438_vm0, %v1127_v45  ;;  %v1215_v48 = vpop.permute.xlu1 %1214  ;;  %v1213_v49 = vpop.permute.xlu0 %1212 }
  0xaf   : > { %v1218_v51 = vsel %vm1216_vm5, %v1215_v48, %v1213_v49  ;;  %v1217_v59 = vsel %vm1216_vm5, %v1213_v49, %v1215_v48 }
  0xb0   : > { %v1231_v54 = vmul.f32 %v4290_v50, %v1218_v51  ;;  %v1230_v2 = vmul.f32 %v4307_v58, %v1217_v59 }
  0xb2   : > { %v1332_v55 = vpop.permute.xlu1 %1331  ;;  %v1330_v56 = vpop.permute.xlu0 %1329 }
  0xb3   : > { %v1333_v63 = vsel %vm416_vm6, %v1330_v56, %v1332_v55  ;;  %v1334_v12 = vsel %vm416_vm6, %v1332_v55, %v1330_v56  ;;  %v4411_v56 = vrot.slane %v3566_v47, %v4165_v4  ;;  %v1328_v4 = vld [vmem:[%s4696_s3] sm:$0xff] }
  0xb4   : > { %3598 = vmatmul.mubr.msk.f32.vlgmr.msra.gmra.mrb[0].mxu0 %vm434_vm1, %v3595_v52  ;;  %v1336_v5 = vmul.f32 %v1333_v63, %v4313_v60  ;;  %v1335_v20 = vmul.f32 %v1334_v12, %v4330_v11  ;;  %v4437_v12 = vrot.slane %v3566_v47, %v4160_v3  ;;  %v3626_v47 = vld [vmem:[%s4696_s3 + $0x28] sm:$0xff] }
  0xb5   : > { %3601 = vmatpush1.msk.msra.mxu0 %vm438_vm0, %v1126_v53  ;;  %1203 = vmatprep.mubr.f32.mxu0 %v4047_v1  ;;  %v4401_v53 = vrot.slane %v3565_v28, %v4160_v3 }
  0xb6   : > { %3604 = vmatprep.subr.msk.mxu0 %vm438_vm0, %v1231_v54  ;;  %v1323_v61 = vpop.permute.xlu1 %1322  ;;  %v1321_v62 = vpop.permute.xlu0 %1320  ;;  %v411_v54 = vld [vmem:[%s4695_s2] sm:$0xff] }
  0xb7   : > { %v1324_v17 = vsel %vm395_vm7, %v1321_v62, %v1323_v61  ;;  %v1325_v35 = vsel %vm395_vm7, %v1323_v61, %v1321_v62 }
  0xb8   : > { %v1327_v21 = vmul.f32 %v1324_v17, %v4336_v14  ;;  %v1326_v42 = vmul.f32 %v1325_v35, %v4363_v33  ;;  %v3579_v17 = vld [vmem:[%s4695_s2 + $0x10] sm:$0xff]  ;;  %v3618_v35 = vld [vmem:[%s4696_s3 + $0x18] sm:$0xff] }
  0xba   : > { %v1502_v6 = vpop.permute.xlu1 %1501  ;;  %v1500_v7 = vpop.permute.xlu0 %1499 }
  0xbb   : > { %v1503_v40 = vsel %vm600_vm8, %v1500_v7, %v1502_v6  ;;  %v1504_v55 = vsel %vm600_vm8, %v1502_v6, %v1500_v7 }
  0xbc   : > { %3602 = vmatmul.mubr.msk.f32.vlgmr.msra.gmra.mrb[0].mxu0 %vm434_vm1, %v3599_v0  ;;  %v1506_v43 = vmul.f32 %v1503_v40, %v4371_v36  ;;  %v1505_v62 = vmul.f32 %v1504_v55, %v4401_v53 }
  0xbd   : > { %3605 = vmatpush1.msk.msra.mxu0 %vm438_vm0, %v1230_v2  ;;  %1307 = vmatprep.mubr.f32.mxu0 %v4047_v1 }
  0xbe   : > { %3608 = vmatprep.subr.msk.mxu0 %vm438_vm0, %v1336_v5  ;;  %v4338_v15 = vpop.permute.xlu1 %1593  ;;  %v4340_v16 = vpop.permute.xlu0 %1591 }
  0xbf   : > { %v1595_v61 = vsel %vm704_vm9, %v4340_v16, %v4338_v15 }
  0xc0   : > { %v1598_v63 = vmul.f32 %v1595_v61, %v4411_v56 }
  0xc2   : > { %v415_v22 = vpop.permute.xlu1 %414  ;;  %v413_v23 = vpop.permute.xlu0 %412 }
  0xc3   : > { %v417_v29 = vsel %vm416_vm6, %v413_v23, %v415_v22  ;;  %v418_v30 = vsel %vm416_vm6, %v415_v22, %v413_v23  ;;  %v3614_v22 = vld [vmem:[%s4696_s3 + $0x10] sm:$0xff] }
  0xc4   : > { %3606 = vmatmul.mubr.msk.f32.vlgmr.msra.gmra.mrb[0].mxu0 %vm434_vm1, %v3603_v18  ;;  %v430_v31 = vmul.f32 %v4330_v11, %v418_v30  ;;  %v431_v32 = vmul.f32 %v4313_v60, %v417_v29  ;;  %v1596_v18 = vsel %vm704_vm9, %v4338_v15, %v4340_v16  ;;  %v1687_v15 = vcombine.high %v4185_v13, %v4185_v13 }
  0xc5   : > { %3609 = vmatpush1.msk.msra.mxu0 %vm438_vm0, %v1335_v20  ;;  %1412 = vmatprep.mubr.f32.mxu0 %v4047_v1  ;;  %v1597_v3 = vmul.f32 %v1596_v18, %v4437_v12 }
  0xc6   : > { %3611 = vmatprep.subr.msk.mxu0 %vm438_vm0, %v1327_v21  ;;  %v4374_v37 = vpop.permute.xlu1 %1770  ;;  %v4376_v39 = vpop.permute.xlu0 %1768  ;;  %3573 = vmatprep.subr.msk.mxu1 %vm438_vm0, %v431_v32  ;;  %v3583_v32 = vld [vmem:[%s4695_s2 + $0x18] sm:$0xff] }
  0xc7   : > { %3574 = vmatpush1.msk.msra.mxu1 %vm438_vm0, %v430_v31 }
  0xc8   : > { %3575 = vmatmul.mubr.msk.f32.vlgmr.msra.gmra.mrb[0].mxu1 %vm434_vm1, %v3572_v34  ;;  %v1773_v34 = vsel %vm904_vm2, %v4374_v37, %v4376_v39 }
  0xc9   : > { %589 = vmatprep.mubr.f32.mxu1 %v4047_v1  ;;  %v1775_v40 = vmul.f32 %v1773_v34, %v4239_v25 }
  0xca   : > { %v392_v44 = vpop.permute.xlu1 %391  ;;  %v390_v45 = vpop.permute.xlu0 %389 }
  0xcb   : > { %v396_v48 = vsel %vm395_vm7, %v390_v45, %v392_v44  ;;  %v397_v49 = vsel %vm395_vm7, %v392_v44, %v390_v45  ;;  %v3622_v44 = vld [vmem:[%s4696_s3 + $0x20] sm:$0xff] }
  0xcc   : > { %3610 = vmatmul.mubr.msk.f32.vlgmr.msra.gmra.mrb[0].mxu0 %vm434_vm1, %v3607_v41  ;;  %v409_v51 = vmul.f32 %v4363_v33, %v397_v49  ;;  %v410_v52 = vmul.f32 %v4336_v14, %v396_v48  ;;  %v1772_v41 = vsel %vm904_vm2, %v4376_v39, %v4374_v37 }
  0xcd   : > { %3612 = vmatpush1.msk.msra.mxu0 %vm438_vm0, %v1326_v42  ;;  %1492 = vmatprep.mubr.f32.mxu0 %v4047_v1 }
  0xce   : > { %3615 = vmatprep.subr.msk.mxu0 %vm438_vm0, %v1506_v43  ;;  %v4414_v57 = vpop.permute.xlu1 %1862  ;;  %v1861_v59 = vpop.permute.xlu0 %1860  ;;  %3576 = vmatprep.subr.msk.mxu1 %vm438_vm0, %v410_v52  ;;  %v1774_v43 = vmul.f32 %v1772_v41, %v4236_v24 }
  0xcf   : > { %3577 = vmatpush1.msk.msra.mxu1 %vm438_vm0, %v409_v51  ;;  %v1865_v42 = vsel %vm1008_vm3, %v4414_v57, %v1861_v59  ;;  %v1864_v37 = vsel %vm1008_vm3, %v1861_v59, %v4414_v57  ;;  %v3630_v57 = vld [vmem:[%s4696_s3 + $0x30] sm:$0xff] }
  0xd0   : > { %3578 = vmatmul.mubr.msk.f32.vlgmr.msra.gmra.mrb[0].mxu1 %vm434_vm1, %v411_v54  ;;  %v1866_v45 = vmul.f32 %v1864_v37, %v4246_v27  ;;  %v2966_v37 = vld [vmem:[#allocation2 + $0x150] sm:$0xff] }
  0xd1   : > { %691 = vmatprep.mubr.f32.mxu1 %v4047_v1 }
  0xd2   : > { %v599_v0 = vpop.permute.xlu1 %598  ;;  %v597_v2 = vpop.permute.xlu0 %596 }
  0xd3   : > { %v601_v5 = vsel %vm600_vm8, %v597_v2, %v599_v0  ;;  %v602_v6 = vsel %vm600_vm8, %v599_v0, %v597_v2 }
  0xd4   : > { %3613 = vmatmul.mubr.msk.f32.vlgmr.msra.gmra.mrb[0].mxu0 %vm434_vm1, %v1328_v4  ;;  %v614_v7 = vmul.f32 %v4401_v53, %v602_v6  ;;  %v615_v10 = vmul.f32 %v4371_v36, %v601_v5 }
  0xd5   : > { %3616 = vmatpush1.msk.msra.mxu0 %vm438_vm0, %v1505_v62  ;;  %1582 = vmatprep.mubr.f32.mxu0 %v4047_v1  ;;  %v3634_v62 = vld [vmem:[%s4696_s3 + $0x38] sm:$0xff] }
  0xd6   : > { %3619 = vmatprep.subr.msk.mxu0 %vm438_vm0, %v1598_v63  ;;  %v1955_v20 = vpop.permute.xlu1 %1954  ;;  %v1953_v21 = vpop.permute.xlu0 %1952  ;;  %3580 = vmatprep.subr.msk.mxu1 %vm438_vm0, %v615_v10  ;;  %v3638_v63 = vld [vmem:[%s4696_s3 + $0x40] sm:$0xff] }
  0xd7   : > { %3581 = vmatpush1.msk.msra.mxu1 %vm438_vm0, %v614_v7  ;;  %v1957_v39 = vsel %vm1112_vm4, %v1955_v20, %v1953_v21  ;;  %v1956_v52 = vsel %vm1112_vm4, %v1953_v21, %v1955_v20 }
  0xd8   : > { %3582 = vmatmul.mubr.msk.f32.vlgmr.msra.gmra.mrb[0].mxu1 %vm434_vm1, %v3579_v17  ;;  %v1959_v48 = vmul.f32 %v1957_v39, %v4264_v38  ;;  %v1958_v55 = vmul.f32 %v1956_v52, %v4284_v46 }
  0xd9   : > { %795 = vmatprep.mubr.f32.mxu1 %v4047_v1 }
  0xda   : > { %v703_v16 = vpop.permute.xlu1 %702  ;;  %v701_v23 = vpop.permute.xlu0 %700 }
  0xdb   : > { %v705_v28 = vsel %vm704_vm9, %v701_v23, %v703_v16  ;;  %v706_v29 = vsel %vm704_vm9, %v703_v16, %v701_v23  ;;  %v2935_v16 = vld [vmem:[#allocation2 + $0x58] sm:$0xff] }
  0xdc   : > { %3617 = vmatmul.mubr.msk.f32.vlgmr.msra.gmra.mrb[0].mxu0 %vm434_vm1, %v3614_v22  ;;  %v718_v30 = vmul.f32 %v4437_v12, %v706_v29  ;;  %v719_v31 = vmul.f32 %v4411_v56, %v705_v28  ;;  %v2914_v22 = vld [vmem:[%s4699_s6] sm:$0xff]  ;;  %v2926_v28 = vld [vmem:[#allocation2 + $0x10] sm:$0xff] }
  0xdd   : > { %3620 = vmatpush1.msk.msra.mxu0 %vm438_vm0, %v1597_v3  ;;  %1674 = vmatprep.mubr.f32.mxu0 %v4047_v1  ;;  %v2934_v29 = vld [vmem:[#allocation2 + $0x50] sm:$0xff] }
  0xde   : > { %3623 = vmatprep.subr.msk.mxu0 %vm438_vm0, %v1687_v15  ;;  %3584 = vmatprep.subr.msk.mxu1 %vm438_vm0, %v719_v31  ;;  %v2047_v49 = vpop.permute.xlu1 %2046  ;;  %v2045_v51 = vpop.permute.xlu0 %2044  ;;  %v2927_v15 = vld [vmem:[#allocation2 + $0x18] sm:$0xff] }
  0xdf   : > { %3585 = vmatpush1.msk.msra.mxu1 %vm438_vm0, %v718_v30  ;;  %v2049_v54 = vsel %vm1216_vm5, %v2047_v49, %v2045_v51  ;;  %v2048_v61 = vsel %vm1216_vm5, %v2045_v51, %v2047_v49  ;;  %v3728_v23 = vpack.c.bf16 %v2935_v16, %v2927_v15  ;;  %v3730_v30 = vpack.c.bf16 %v2934_v29, %v2926_v28  ;;  %v2943_v31 = vld [vmem:[#allocation2 + $0x98] sm:$0xff]  ;;  %v2974_v49 = vld [vmem:[#allocation2 + $0x190] sm:$0xff] }
  0xe0   : > { %3586 = vmatmul.mubr.msk.f32.vlgmr.msra.gmra.mrb[0].mxu1 %vm434_vm1, %v3583_v32  ;;  %v2051_v59 = vmul.f32 %v2049_v54, %v4290_v50  ;;  %v2050_v4 = vmul.f32 %v2048_v61, %v4307_v58  ;;  %v2951_v32 = vld [vmem:[#allocation2 + $0xd8] sm:$0xff]  ;;  %v2982_v51 = vld [vmem:[#allocation2 + $0x1d0] sm:$0xff] }
  0xe1   : > { %2235 = vmatprep.mubr.f32.mxu1 %v4047_v1  ;;  %v3732_v34 = vpack.c.bf16 %v2951_v32, %v2943_v31  ;;  %v3742_v52 = vpack.c.bf16 %v2982_v51, %v2974_v49  ;;  %v2991_v54 = vld [vmem:[#allocation2 + $0x218] sm:$0xff]  ;;  %v2998_v61 = vld [vmem:[#allocation2 + $0x250] sm:$0xff] }
  0xe2   : > { %v3039_v15 = vld [vmem:[#allocation2 + $0x398] sm:$0xff]  ;;  %v3038_v28 = vld [vmem:[#allocation2 + $0x390] sm:$0xff] }
  0xe3   : > { %v3047_v16 = vld [vmem:[#allocation2 + $0x3d8] sm:$0xff]  ;;  %v3046_v29 = vld [vmem:[#allocation2 + $0x3d0] sm:$0xff] }
  0xe4   : > { %3621 = vmatmul.mubr.msk.f32.vlgmr.msra.gmra.mrb[0].mxu0 %vm434_vm1, %v3618_v35  ;;  %v2942_v35 = vld [vmem:[#allocation2 + $0x90] sm:$0xff]  ;;  %v3055_v31 = vld [vmem:[#allocation2 + $0x418] sm:$0xff] }
  0xe5   : > { %3624 = vmatpush1.msk.msra.mxu0 %vm438_vm0, %v4185_v13  ;;  %1759 = vmatprep.mubr.f32.mxu0 %v4047_v1  ;;  %v1867_v13 = vmul.f32 %v1865_v42, %v4243_v26  ;;  %v2959_v42 = vld [vmem:[#allocation2 + $0x118] sm:$0xff]  ;;  %v3086_v49 = vld [vmem:[#allocation2 + $0x510] sm:$0xff] }
  0xe6   : > { %3627 = vmatprep.subr.msk.mxu0 %vm438_vm0, %v1775_v40  ;;  %v2950_v40 = vld [vmem:[#allocation2 + $0xd0] sm:$0xff]  ;;  %v3063_v32 = vld [vmem:[#allocation2 + $0x458] sm:$0xff] }
  0xe7   : > { %v3734_v41 = vpack.c.bf16 %v2950_v40, %v2942_v35  ;;  %v3054_v35 = vld [vmem:[#allocation2 + $0x410] sm:$0xff] }
  0xe8   : > { %v3062_v40 = vld [vmem:[#allocation2 + $0x450] sm:$0xff] }
  0xe9   : > { %v3094_v51 = vld [vmem:[#allocation2 + $0x550] sm:$0xff] }
  0xec   : > { %3625 = vmatmul.mubr.msk.f32.vlgmr.msra.gmra.mrb[0].mxu0 %vm434_vm1, %v3622_v44 }
  0xed   : > { %3628 = vmatpush1.msk.msra.mxu0 %vm438_vm0, %v1774_v43  ;;  %1851 = vmatprep.mubr.f32.mxu0 %v4047_v1  ;;  %v2967_v43 = vld [vmem:[#allocation2 + $0x158] sm:$0xff] }
  0xee   : > { %3631 = vmatprep.subr.msk.mxu0 %vm438_vm0, %v1867_v13  ;;  %v3736_v44 = vpack.c.bf16 %v2967_v43, %v2959_v42  ;;  %v2958_v13 = vld [vmem:[#allocation2 + $0x110] sm:$0xff]  ;;  %v3071_v42 = vld [vmem:[#allocation2 + $0x498] sm:$0xff] }
  0xef   : > { %v2142_v6 = vpop.permute.xlu0 %2141  ;;  %v3738_v39 = vpack.c.bf16 %v2966_v37, %v2958_v13  ;;  %v3079_v43 = vld [vmem:[#allocation2 + $0x4d8] sm:$0xff]  ;;  %v3070_v13 = vld [vmem:[#allocation2 + $0x490] sm:$0xff] }
  0xf0   : > { %v3078_v37 = vld [vmem:[#allocation2 + $0x4d0] sm:$0xff] }
  0xf4   : > { %3629 = vmatmul.mubr.msk.f32.vlgmr.msra.gmra.mrb[0].mxu0 %vm434_vm1, %v3626_v47  ;;  %v2983_v47 = vld [vmem:[#allocation2 + $0x1d8] sm:$0xff] }
  0xf5   : > { %3632 = vmatpush1.msk.msra.mxu0 %vm438_vm0, %v1866_v45  ;;  %1943 = vmatprep.mubr.f32.mxu0 %v4047_v1  ;;  %v2975_v45 = vld [vmem:[#allocation2 + $0x198] sm:$0xff] }
  0xf6   : > { %3635 = vmatprep.subr.msk.mxu0 %vm438_vm0, %v1959_v48  ;;  %v3740_v48 = vpack.c.bf16 %v2983_v47, %v2975_v45  ;;  %v3087_v45 = vld [vmem:[#allocation2 + $0x518] sm:$0xff] }
  0xf7   : > { %v3095_v47 = vld [vmem:[#allocation2 + $0x558] sm:$0xff] }
  0xfc   : > { %3633 = vmatmul.mubr.msk.f32.vlgmr.msra.gmra.mrb[0].mxu0 %vm434_vm1, %v3630_v57 }
  0xfd   : > { %3636 = vmatpush1.msk.msra.mxu0 %vm438_vm0, %v1958_v55  ;;  %2035 = vmatprep.mubr.f32.mxu0 %v4047_v1  ;;  %v2999_v55 = vld [vmem:[#allocation2 + $0x258] sm:$0xff] }
  0xfe   : > { %3639 = vmatprep.subr.msk.mxu0 %vm438_vm0, %v2051_v59  ;;  %v3744_v57 = vpack.c.bf16 %v2999_v55, %v2991_v54  ;;  %v2990_v59 = vld [vmem:[#allocation2 + $0x210] sm:$0xff]  ;;  %v3103_v54 = vld [vmem:[#allocation2 + $0x598] sm:$0xff] }
  0xff   : > { %v3111_v55 = vld [vmem:[#allocation2 + $0x5d8] sm:$0xff] }
 0x104   : > { %3637 = vmatmul.mubr.msk.f32.vlgmr.msra.gmra.mrb[0].mxu0 %vm434_vm1, %v3634_v62  ;;  %v3746_v62 = vpack.c.bf16 %v2998_v61, %v2990_v59  ;;  %v3102_v59 = vld [vmem:[#allocation2 + $0x590] sm:$0xff] }
 0x105   : > { %3640 = vmatpush1.msk.msra.mxu0 %vm438_vm0, %v2050_v4  ;;  %2127 = vmatprep.mubr.f32.mxu0 %v4047_v1  ;;  %v3007_v4 = vld [vmem:[#allocation2 + $0x298] sm:$0xff]  ;;  %v3110_v61 = vld [vmem:[#allocation2 + $0x5d0] sm:$0xff] }
 0x106   : > { %3729 = vmatprep.subr.bf16.mxu0 %v3728_v23  ;;  %v3756_v23 = vpack.c.bf16 %v3047_v16, %v3039_v15  ;;  %v3151_v16 = vld [vmem:[#allocation2 + $0x718] sm:$0xff] }
 0x10c   : > { %3641 = vmatmul.mubr.msk.f32.vlgmr.msra.gmra.mrb[0].mxu0 %vm434_vm1, %v3638_v63  ;;  %v3015_v63 = vld [vmem:[#allocation2 + $0x2d8] sm:$0xff] }
 0x10d   : > { %3731 = vmatpush1.bf16.msra.mxu0 %v3730_v30  ;;  %v3758_v30 = vpack.c.bf16 %v3046_v29, %v3038_v28  ;;  %v3150_v29 = vld [vmem:[#allocation2 + $0x710] sm:$0xff] }
 0x10e   : > { %3733 = vmatprep.subr.bf16.mxu0 %v3732_v34  ;;  %v3760_v34 = vpack.c.bf16 %v3063_v32, %v3055_v31 }
 0x111   : > { %3735 = vmatpush1.bf16.msra.mxu0 %v3734_v41  ;;  %v3762_v41 = vpack.c.bf16 %v3062_v40, %v3054_v35 }
 0x112   : > { %3737 = vmatprep.subr.bf16.mxu0 %v3736_v44  ;;  %v3764_v44 = vpack.c.bf16 %v3079_v43, %v3071_v42  ;;  %v3642_v43 = vld [vmem:[%s4698_s5 + $0x8] sm:$0xff] }
 0x115   : > { %3739 = vmatpush1.bf16.msra.mxu0 %v3738_v39  ;;  %v3766_v39 = vpack.c.bf16 %v3078_v37, %v3070_v13 }
 0x116   : > { %3741 = vmatprep.subr.bf16.mxu0 %v3740_v48  ;;  %v3768_v48 = vpack.c.bf16 %v3095_v47, %v3087_v45 }
 0x119   : > { %3743 = vmatpush1.bf16.msra.mxu0 %v3742_v52  ;;  %v3770_v52 = vpack.c.bf16 %v3094_v51, %v3086_v49 }
 0x11a   : > { %3745 = vmatprep.subr.bf16.mxu0 %v3744_v57  ;;  %v3772_v57 = vpack.c.bf16 %v3111_v55, %v3103_v54 }
 0x11d   : > { %3747 = vmatpush1.bf16.msra.mxu0 %v3746_v62  ;;  %v3774_v62 = vpack.c.bf16 %v3110_v61, %v3102_v59 }
 0x1b3   : > { %v797_v0 = vpop.f32.mrb[0].mxu1 }
 0x1b4   : > { %v799_v2 = vpop.f32.mrb[1].mxu1 }
 0x1df   : > { %v2129_v5 = vpop.f32.mrb[0].mxu0 }
 0x1e0   : > { %v3920_v7 = vadd.f32 %v2129_v5, %v797_v0  ;;  %v2131_v10 = vpop.f32.mrb[1].mxu0  ;;  %v3748_v0 = vpack.c.bf16 %v3015_v63, %v3007_v4  ;;  %v3014_v5 = vld [vmem:[#allocation2 + $0x2d0] sm:$0xff]  ;;  %v3119_v4 = vld [vmem:[#allocation2 + $0x618] sm:$0xff] }
 0x1e1   : > { %v3921_v17 = vadd.f32 %v2131_v10, %v799_v2  ;;  %v3006_v2 = vld [vmem:[#allocation2 + $0x290] sm:$0xff]  ;;  %v3031_v10 = vld [vmem:[#allocation2 + $0x358] sm:$0xff] }
 0x1e2   : > { %v2144_v18 = vadd.f32 %v3920_v7, %v2142_v6  ;;  %3749 = vmatprep.subr.bf16.mxu0 %v3748_v0  ;;  %v3023_v7 = vld [vmem:[#allocation2 + $0x318] sm:$0xff] }
 0x1e3   : > { %v2145_v20 = vadd.f32 %v3921_v17, %v2142_v6  ;;  %v3750_v6 = vpack.c.bf16 %v3014_v5, %v3006_v2  ;;  %v3752_v17 = vpack.c.bf16 %v3031_v10, %v3023_v7  ;;  %v3127_v63 = vld [vmem:[#allocation2 + $0x658] sm:$0xff]  ;;  %v3118_v2 = vld [vmem:[#allocation2 + $0x610] sm:$0xff] }
 0x1e4   : > { %v4545_v21 = vmax.f32 %v2144_v18, 0.0  ;;  %v3022_v18 = vld [vmem:[#allocation2 + $0x310] sm:$0xff]  ;;  %v3776_v0 = vpack.c.bf16 %v3127_v63, %v3119_v4  ;;  %v3135_v7 = vld [vmem:[#allocation2 + $0x698] sm:$0xff] }
 0x1e5   : > { %v4551_v3 = vmax.f32 %v2145_v20, 0.0  ;;  %3751 = vmatpush1.bf16.msra.mxu0 %v3750_v6  ;;  %v3030_v20 = vld [vmem:[#allocation2 + $0x350] sm:$0xff]  ;;  %v3143_v10 = vld [vmem:[#allocation2 + $0x6d8] sm:$0xff] }
 0x1e6   : > { %2148 = vrot.lane.b32.xlu0 %v4545_v21, %s4053_s24  ;;  %2157 = vrot.lane.b32.xlu1 %v4545_v21, %s4052_s23  ;;  %v3126_v5 = vld [vmem:[#allocation2 + $0x650] sm:$0xff]  ;;  %v3647_v4 = vld [vmem:[%s4698_s5 + $0x18] sm:$0xff] }
 0x1e7   : > { %3753 = vmatprep.subr.bf16.mxu0 %v3752_v17  ;;  %v3778_v6 = vpack.c.bf16 %v3126_v5, %v3118_v2  ;;  %v3780_v17 = vpack.c.bf16 %v3143_v10, %v3135_v7 }
 0x1ea   : > { %2316 = vrot.lane.b32.xlu0 %v4545_v21, %s4054_s25  ;;  %2159 = vrot.lane.b32.xlu1 %v4551_v3, %s4052_s23 }
 0x1ee   : > { %2402 = vrot.lane.b32.xlu0 %v4545_v21, %s4055_s26  ;;  %2150 = vrot.lane.b32.xlu1 %v4551_v3, %s4053_s24  ;;  %s3663_s24 = sshll.u32 %s4711_s10, 6 }
 0x1f2   : > { %2570 = vrot.lane.b32.xlu0 %v4545_v21, %s4048_s14  ;;  %2318 = vrot.lane.b32.xlu1 %v4551_v3, %s4054_s25 }
 0x1f6   : > { %2656 = vrot.lane.b32.xlu0 %v4545_v21, %s4049_s15  ;;  %2404 = vrot.lane.b32.xlu1 %v4551_v3, %s4055_s26 }
 0x1fa   : > { %2742 = vrot.lane.b32.xlu0 %v4545_v21, %s4050_s19  ;;  %2572 = vrot.lane.b32.xlu1 %v4551_v3, %s4048_s14 }
 0x1fe   : > { %2828 = vrot.lane.b32.xlu0 %v4545_v21, %s4051_s22  ;;  %2658 = vrot.lane.b32.xlu1 %v4551_v3, %s4049_s15 }
 0x202   : > { %2917 = vperm.xlu0 %4001, %v2914_v22   ;;  %2744 = vrot.lane.b32.xlu1 %v4551_v3, %s4050_s19  ;;  %v3754_v22 = vpack.c.bf16 %v3030_v20, %v3022_v18  ;;  %v3134_v18 = vld [vmem:[#allocation2 + $0x690] sm:$0xff]  ;;  %s367_s19 = scalar_lea.vmem %s4702_s9, %s3663_s24 }
 0x203   : > { %v3142_v20 = vld [vmem:[#allocation2 + $0x6d0] sm:$0xff] }
 0x204   : > { %3755 = vmatpush1.bf16.msra.mxu0 %v3754_v22  ;;  %v3782_v15 = vpack.c.bf16 %v3142_v20, %v3134_v18 }
 0x205   : > { %3757 = vmatprep.subr.bf16.mxu0 %v3756_v23  ;;  %v3159_v23 = vld [vmem:[#allocation2 + $0x758] sm:$0xff] }
 0x206   : > { %2830 = vrot.lane.b32.xlu1 %v4551_v3, %s4051_s22  ;;  %v3784_v28 = vpack.c.bf16 %v3159_v23, %v3151_v16  ;;  %v2925_v23 = vld [vmem:[#allocation2 + $0x8] sm:$0xff] }
 0x208   : > { %3759 = vmatpush1.bf16.msra.mxu0 %v3758_v30  ;;  %v3158_v30 = vld [vmem:[#allocation2 + $0x750] sm:$0xff] }
 0x209   : > { %3761 = vmatprep.subr.bf16.mxu0 %v3760_v34  ;;  %v3786_v34 = vpack.c.bf16 %v3158_v30, %v3150_v29  ;;  %v3655_v30 = vld [vmem:[%s4698_s5 + $0x38] sm:$0xff] }
 0x20c   : > { %3763 = vmatpush1.bf16.msra.mxu0 %v3762_v41 }
 0x20d   : > { %3765 = vmatprep.subr.bf16.mxu0 %v3764_v44 }
 0x210   : > { %3767 = vmatpush1.bf16.msra.mxu0 %v3766_v39 }
 0x211   : > { %3769 = vmatprep.subr.bf16.mxu0 %v3768_v48 }
 0x214   : > { %3771 = vmatpush1.bf16.msra.mxu0 %v3770_v52 }
 0x215   : > { %3773 = vmatprep.subr.bf16.mxu0 %v3772_v57  ;;  %v3645_v57 = vld [vmem:[%s4698_s5 + $0x10] sm:$0xff] }
 0x218   : > { %3775 = vmatpush1.bf16.msra.mxu0 %v3774_v62 }
 0x219   : > { %3777 = vmatprep.subr.bf16.mxu0 %v3776_v0 }
 0x21c   : > { %3779 = vmatpush1.bf16.msra.mxu0 %v3778_v6 }
 0x21d   : > { %3781 = vmatprep.subr.bf16.mxu0 %v3780_v17 }
 0x220   : > { %3783 = vmatpush1.bf16.msra.mxu0 %v3782_v15 }
 0x221   : > { %3785 = vmatprep.subr.bf16.mxu0 %v3784_v28  ;;  %v2933_v28 = vld [vmem:[#allocation2 + $0x48] sm:$0xff] }
 0x224   : > { %3787 = vmatpush1.bf16.msra.mxu0 %v3786_v34  ;;  %v2941_v34 = vld [vmem:[#allocation2 + $0x88] sm:$0xff] }
 0x258   : > { %v2158_v22 = vpop.permute.xlu1 %2157  ;;  %v2149_v31 = vpop.permute.xlu0 %2148 }
 0x25c   : > { %v2160_v32 = vpop.permute.xlu1 %2159  ;;  %v2317_v39 = vpop.permute.xlu0 %2316 }
 0x25d   : > { %v2161_v35 = vsel %vm416_vm6, %v2158_v22, %v2160_v32  ;;  %v2162_v40 = vsel %vm416_vm6, %v2160_v32, %v2158_v22  ;;  %v2932_v32 = vld [vmem:[#allocation2 + $0x40] sm:$0xff] }
 0x25e   : > { %v2163_v41 = vmul.f32 %v2162_v40, %v4330_v11  ;;  %v2164_v42 = vmul.f32 %v2161_v35, %v4313_v60  ;;  %v2949_v35 = vld [vmem:[#allocation2 + $0xc8] sm:$0xff] }
 0x260   : > { %2171 = vmatprep.subr.mxu1 %v2164_v42  ;;  %v2151_v44 = vpop.permute.xlu1 %2150  ;;  %v2940_v42 = vld [vmem:[#allocation2 + $0x80] sm:$0xff] }
 0x261   : > { %v2152_v13 = vsel %vm395_vm7, %v2149_v31, %v2151_v44  ;;  %v2153_v37 = vsel %vm395_vm7, %v2151_v44, %v2149_v31  ;;  %2172 = vmatpush1.msra.mxu1 %v2163_v41  ;;  %v3664_v31 = vpack.c.bf16 %v2933_v28, %v2925_v23  ;;  %v3668_v41 = vpack.c.bf16 %v2949_v35, %v2941_v34  ;;  %v2957_v44 = vld [vmem:[#allocation2 + $0x108] sm:$0xff]  ;;  %v3100_v35 = vld [vmem:[#allocation2 + $0x580] sm:$0xff] }
 0x262   : > { %v2154_v11 = vmul.f32 %v2153_v37, %v4363_v33  ;;  %v2155_v60 = vmul.f32 %v2152_v13, %v4336_v14  ;;  %3643 = vmatmul.mubr.msk.f32.vlgmr.msra.gmra.mrb[2].mxu1 %vm2167_vm10, %v3642_v43  ;;  %v2156_v33 = vld [vmem:[%s4698_s5] sm:$0xff]  ;;  %v2403_v14 = vpop.permute.xlu0 %2402  ;;  %v3093_v23 = vld [vmem:[#allocation2 + $0x548] sm:$0xff] }
 0x263   : > { %2309 = vmatprep.mubr.f32.mxu1 %v4047_v1  ;;  %v2948_v43 = vld [vmem:[#allocation2 + $0xc0] sm:$0xff] }
 0x264   : > { %2245 = vmatprep.subr.mxu1 %v2155_v60  ;;  %v2319_v45 = vpop.permute.xlu1 %2318  ;;  %v3670_v13 = vpack.c.bf16 %v2948_v43, %v2940_v42  ;;  %v2956_v37 = vld [vmem:[#allocation2 + $0x100] sm:$0xff]  ;;  %v2981_v60 = vld [vmem:[#allocation2 + $0x1c8] sm:$0xff] }
 0x265   : > { %v2320_v47 = vsel %vm600_vm8, %v2317_v39, %v2319_v45  ;;  %2246 = vmatpush1.msra.mxu1 %v2154_v11  ;;  %v2321_v48 = vsel %vm600_vm8, %v2319_v45, %v2317_v39  ;;  %v2964_v39 = vld [vmem:[#allocation2 + $0x140] sm:$0xff]  ;;  %v2973_v11 = vld [vmem:[#allocation2 + $0x188] sm:$0xff] }
 0x266   : > { %v2323_v49 = vmul.f32 %v2320_v47, %v4371_v36  ;;  %v2322_v52 = vmul.f32 %v2321_v48, %v4401_v53  ;;  %v2571_v61 = vpop.permute.xlu0 %2570  ;;  %v3674_v45 = vpack.c.bf16 %v2964_v39, %v2956_v37  ;;  %v3676_v47 = vpack.c.bf16 %v2981_v60, %v2973_v11  ;;  %v2972_v48 = vld [vmem:[#allocation2 + $0x180] sm:$0xff] }
 0x267   : > { %v3132_v11 = vld [vmem:[#allocation2 + $0x680] sm:$0xff] }
 0x268   : > { %2329 = vmatprep.subr.mxu1 %v2323_v49  ;;  %v2405_v51 = vpop.permute.xlu1 %2404  ;;  %v2980_v49 = vld [vmem:[#allocation2 + $0x1c0] sm:$0xff] }
 0x269   : > { %v2406_v54 = vsel %vm704_vm9, %v2403_v14, %v2405_v51  ;;  %v2407_v36 = vsel %vm704_vm9, %v2405_v51, %v2403_v14  ;;  %v2997_v14 = vld [vmem:[#allocation2 + $0x248] sm:$0xff]  ;;  %v3678_v51 = vpack.c.bf16 %v2980_v49, %v2972_v48  ;;  %v3140_v60 = vld [vmem:[#allocation2 + $0x6c0] sm:$0xff] }
 0x26a   : > { %v2409_v55 = vmul.f32 %v2406_v54, %v4411_v56  ;;  %3644 = vmatmul.mubr.msk.f32.vlgmr.msra.gmra.mrb[2].mxu1 %vm2167_vm10, %v2156_v33  ;;  %v2408_v53 = vmul.f32 %v2407_v36, %v4437_v12  ;;  %v2491_v56 = vmul.f32 %v4551_v3, %v4179_v9  ;;  %v2490_v12 = vmul.f32 %v4545_v21, %v4173_v8  ;;  %v2657_v3 = vpop.permute.xlu0 %2656  ;;  %v3649_v8 = vld [vmem:[%s4698_s5 + $0x20] sm:$0xff]  ;;  %v2989_v33 = vld [vmem:[#allocation2 + $0x208] sm:$0xff] }
 0x26b   : > { %2330 = vmatpush1.msra.mxu1 %v2322_v52  ;;  %2393 = vmatprep.mubr.f32.mxu1 %v4047_v1  ;;  %v3680_v52 = vpack.c.bf16 %v2997_v14, %v2989_v33  ;;  %v2988_v54 = vld [vmem:[#allocation2 + $0x200] sm:$0xff]  ;;  %v3005_v36 = vld [vmem:[#allocation2 + $0x288] sm:$0xff]  ;;  %v3718_v48 = vpack.c.bf16 %v3140_v60, %v3132_v11  ;;  %v2979_v11 = vld [vmem:[#allocation2 + $0x1b8] sm:$0xff] }
 0x26c   : > { %2415 = vmatprep.subr.mxu1 %v2409_v55  ;;  %v2573_v59 = vpop.permute.xlu1 %2572  ;;  %v2996_v55 = vld [vmem:[#allocation2 + $0x240] sm:$0xff]  ;;  %v2987_v60 = vld [vmem:[#allocation2 + $0x1f8] sm:$0xff] }
 0x26d   : > { %v2575_v62 = vsel %vm904_vm2, %v2573_v59, %v2571_v61  ;;  %v2574_v0 = vsel %vm904_vm2, %v2571_v61, %v2573_v59  ;;  %v3004_v59 = vld [vmem:[#allocation2 + $0x280] sm:$0xff] }
 0x26e   : > { %v2577_v63 = vmul.f32 %v2575_v62, %v4239_v25  ;;  %v2576_v25 = vmul.f32 %v2574_v0, %v4236_v24  ;;  %v2743_v6 = vpop.permute.xlu0 %2742  ;;  %v3651_v24 = vld [vmem:[%s4698_s5 + $0x28] sm:$0xff]  ;;  %v3012_v61 = vld [vmem:[#allocation2 + $0x2c0] sm:$0xff] }
 0x26f   : > { %v3021_v62 = vld [vmem:[#allocation2 + $0x308] sm:$0xff]  ;;  %v3148_v33 = vld [vmem:[#allocation2 + $0x700] sm:$0xff] }
 0x270   : > { %v2659_v9 = vpop.permute.xlu1 %2658  ;;  %v3037_v0 = vld [vmem:[#allocation2 + $0x388] sm:$0xff]  ;;  %v3156_v14 = vld [vmem:[#allocation2 + $0x740] sm:$0xff] }
 0x271   : > { %v2661_v2 = vsel %vm1008_vm3, %v2659_v9, %v2657_v3  ;;  %v2660_v7 = vsel %vm1008_vm3, %v2657_v3, %v2659_v9  ;;  %v3020_v9 = vld [vmem:[#allocation2 + $0x300] sm:$0xff] }
 0x272   : > { %3646 = vmatmul.mubr.msk.f32.vlgmr.msra.gmra.mrb[2].mxu1 %vm2167_vm10, %v3645_v57  ;;  %v2663_v21 = vmul.f32 %v2661_v2, %v4243_v26  ;;  %v2662_v26 = vmul.f32 %v2660_v7, %v4246_v27  ;;  %v2829_v20 = vpop.permute.xlu0 %2828  ;;  %v3653_v27 = vld [vmem:[%s4698_s5 + $0x30] sm:$0xff]  ;;  %v3013_v57 = vld [vmem:[#allocation2 + $0x2c8] sm:$0xff]  ;;  %v3028_v3 = vld [vmem:[#allocation2 + $0x340] sm:$0xff] }
 0x273   : > { %2416 = vmatpush1.msra.mxu1 %v2408_v53  ;;  %2479 = vmatprep.mubr.f32.mxu1 %v4047_v1  ;;  %v3682_v53 = vpack.c.bf16 %v2996_v55, %v2988_v54  ;;  %v3045_v2 = vld [vmem:[#allocation2 + $0x3c8] sm:$0xff]  ;;  %v3167_v55 = vld [vmem:[#allocation2 + $0x798] sm:$0xff] }
 0x274   : > { %2497 = vmatprep.subr.mxu1 %v2491_v56  ;;  %v2745_v5 = vpop.permute.xlu1 %2744  ;;  %v3684_v56 = vpack.c.bf16 %v3013_v57, %v3005_v36  ;;  %v3061_v7 = vld [vmem:[#allocation2 + $0x448] sm:$0xff]  ;;  %v3175_v57 = vld [vmem:[#allocation2 + $0x7d8] sm:$0xff] }
 0x275   : > { %v2747_v10 = vsel %vm1112_vm4, %v2745_v5, %v2743_v6  ;;  %v2746_v22 = vsel %vm1112_vm4, %v2743_v6, %v2745_v5  ;;  %v3044_v5 = vld [vmem:[#allocation2 + $0x3c0] sm:$0xff]  ;;  %v3053_v6 = vld [vmem:[#allocation2 + $0x408] sm:$0xff] }
 0x276   : > { %v2749_v17 = vmul.f32 %v2747_v10, %v4264_v38  ;;  %v2748_v38 = vmul.f32 %v2746_v22, %v4284_v46  ;;  %v3173_v54 = vld [vmem:[#allocation2 + $0x7c8] sm:$0xff] }
 0x278   : > { %v2831_v18 = vpop.permute.xlu1 %2830 }
 0x279   : > { %v2833_v15 = vsel %vm1216_vm5, %v2831_v18, %v2829_v20  ;;  %v2832_v29 = vsel %vm1216_vm5, %v2829_v20, %v2831_v18  ;;  %v3069_v18 = vld [vmem:[#allocation2 + $0x488] sm:$0xff] }
 0x27a   : > { %3648 = vmatmul.mubr.msk.f32.vlgmr.msra.gmra.mrb[2].mxu1 %vm2167_vm10, %v3647_v4  ;;  %v2835_v16 = vmul.f32 %v2833_v15, %v4290_v50  ;;  %v2834_v46 = vmul.f32 %v2832_v29, %v4307_v58  ;;  %v2924_v50 = vld [vmem:[#allocation2] sm:$0xff]  ;;  %v2965_v58 = vld [vmem:[#allocation2 + $0x148] sm:$0xff] }
 0x27b   : > { %2498 = vmatpush1.msra.mxu1 %v2490_v12  ;;  %2561 = vmatprep.mubr.f32.mxu1 %v4047_v1  ;;  %v3666_v40 = vpack.c.bf16 %v2932_v32, %v2924_v50  ;;  %v3029_v4 = vld [vmem:[#allocation2 + $0x348] sm:$0xff]  ;;  %v3686_v12 = vpack.c.bf16 %v3012_v61, %v3004_v59  ;;  %v3788_v59 = vpack.c.bf16 %v3175_v57, %v3167_v55  ;;  %v3003_v57 = vld [vmem:[#allocation2 + $0x278] sm:$0xff] }
 0x27c   : > { %2583 = vmatprep.subr.mxu1 %v2577_v63  ;;  %v3688_v63 = vpack.c.bf16 %v3029_v4, %v3021_v62  ;;  %v3077_v20 = vld [vmem:[#allocation2 + $0x4c8] sm:$0xff]  ;;  %v3166_v62 = vld [vmem:[#allocation2 + $0x790] sm:$0xff] }
 0x27d   : > { %v3700_v15 = vpack.c.bf16 %v3077_v20, %v3069_v18  ;;  %v3109_v50 = vld [vmem:[#allocation2 + $0x5c8] sm:$0xff]  ;;  %v3174_v4 = vld [vmem:[#allocation2 + $0x7d0] sm:$0xff]  ;;  %3789 = vmatprep.subr.bf16.mxu0 %v3788_v59  ;;  %v2992_v59 = vld [vmem:[#allocation2 + $0x220] sm:$0xff] }
 0x27e   : > { %v2945_v18 = vld [vmem:[#allocation2 + $0xa8] sm:$0xff] }
 0x27f   : > { %v2953_v20 = vld [vmem:[#allocation2 + $0xe8] sm:$0xff] }
 0x280   : > { %v3001_v55 = vld [vmem:[#allocation2 + $0x268] sm:$0xff] }
 0x282   : > { %3650 = vmatmul.mubr.msk.f32.vlgmr.msra.gmra.mrb[2].mxu1 %vm2167_vm10, %v3649_v8  ;;  %v3690_v8 = vpack.c.bf16 %v3028_v3, %v3020_v9  ;;  %v2937_v9 = vld [vmem:[#allocation2 + $0x68] sm:$0xff]  ;;  %v2931_v3 = vld [vmem:[#allocation2 + $0x38] sm:$0xff] }
 0x283   : > { %2584 = vmatpush1.msra.mxu1 %v2576_v25  ;;  %2647 = vmatprep.mubr.f32.mxu1 %v4047_v1  ;;  %v3692_v25 = vpack.c.bf16 %v3045_v2, %v3037_v0  ;;  %v2939_v2 = vld [vmem:[#allocation2 + $0x78] sm:$0xff] }
 0x284   : > { %2669 = vmatprep.subr.mxu1 %v2663_v21  ;;  %v3036_v21 = vld [vmem:[#allocation2 + $0x380] sm:$0xff] }
 0x285   : > { %v3694_v10 = vpack.c.bf16 %v3044_v5, %v3036_v21  ;;  %v2928_v5 = vld [vmem:[#allocation2 + $0x20] sm:$0xff] }
 0x28a   : > { %3652 = vmatmul.mubr.msk.f32.vlgmr.msra.gmra.mrb[2].mxu1 %vm2167_vm10, %v3651_v24  ;;  %v3696_v24 = vpack.c.bf16 %v3061_v7, %v3053_v6 }
 0x28b   : > { %2670 = vmatpush1.msra.mxu1 %v2662_v26  ;;  %2733 = vmatprep.mubr.f32.mxu1 %v4047_v1  ;;  %v3052_v26 = vld [vmem:[#allocation2 + $0x400] sm:$0xff] }
 0x28c   : > { %2755 = vmatprep.subr.mxu1 %v2749_v17  ;;  %v3060_v17 = vld [vmem:[#allocation2 + $0x440] sm:$0xff] }
 0x28d   : > { %v3698_v22 = vpack.c.bf16 %v3060_v17, %v3052_v26  ;;  %v2938_v26 = vld [vmem:[#allocation2 + $0x70] sm:$0xff] }
 0x292   : > { %3654 = vmatmul.mubr.msk.f32.vlgmr.msra.gmra.mrb[2].mxu1 %vm2167_vm10, %v3653_v27  ;;  %v3068_v27 = vld [vmem:[#allocation2 + $0x480] sm:$0xff] }
 0x293   : > { %2756 = vmatpush1.msra.mxu1 %v2748_v38  ;;  %2819 = vmatprep.mubr.f32.mxu1 %v4047_v1  ;;  %v3076_v38 = vld [vmem:[#allocation2 + $0x4c0] sm:$0xff] }
 0x294   : > { %2841 = vmatprep.subr.mxu1 %v2835_v16  ;;  %v3085_v16 = vld [vmem:[#allocation2 + $0x508] sm:$0xff]  ;;  %v3702_v28 = vpack.c.bf16 %v3076_v38, %v3068_v27 }
 0x295   : > { %v3704_v29 = vpack.c.bf16 %v3093_v23, %v3085_v16  ;;  %v2944_v23 = vld [vmem:[#allocation2 + $0xa0] sm:$0xff] }
 0x29a   : > { %3656 = vmatmul.mubr.msk.f32.vlgmr.msra.gmra.mrb[2].mxu1 %vm2167_vm10, %v3655_v30  ;;  %v3084_v30 = vld [vmem:[#allocation2 + $0x500] sm:$0xff] }
 0x29b   : > { %2842 = vmatpush1.msra.mxu1 %v2834_v46  ;;  %2905 = vmatprep.mubr.f32.mxu1 %v4047_v1  ;;  %v3672_v1 = vpack.c.bf16 %v2965_v58, %v2957_v44  ;;  %v3101_v46 = vld [vmem:[#allocation2 + $0x588] sm:$0xff]  ;;  %v3116_v44 = vld [vmem:[#allocation2 + $0x600] sm:$0xff] }
 0x29c   : > { %3665 = vmatprep.subr.bf16.mxu1 %v3664_v31  ;;  %v3092_v31 = vld [vmem:[#allocation2 + $0x540] sm:$0xff]  ;;  %v3708_v34 = vpack.c.bf16 %v3109_v50, %v3101_v46  ;;  %v2961_v46 = vld [vmem:[#allocation2 + $0x128] sm:$0xff]  ;;  %v3796_v50 = vpack.c.bf16 %v2953_v20, %v2945_v18  ;;  %v3027_v18 = vld [vmem:[#allocation2 + $0x338] sm:$0xff] }
 0x29d   : > { %v3706_v32 = vpack.c.bf16 %v3092_v31, %v3084_v30  ;;  %v3124_v58 = vld [vmem:[#allocation2 + $0x640] sm:$0xff]  ;;  %v2946_v30 = vld [vmem:[#allocation2 + $0xb0] sm:$0xff]  ;;  %v3035_v20 = vld [vmem:[#allocation2 + $0x378] sm:$0xff] }
 0x29e   : > { %v3714_v37 = vpack.c.bf16 %v3124_v58, %v3116_v44  ;;  %v2954_v31 = vld [vmem:[#allocation2 + $0xf0] sm:$0xff] }
 0x2a2   : > { %3658 = vmatmul.mubr.msk.f32.vlgmr.msra.gmra.mrb[2].mxu1 %vm2167_vm10, %v3657_v19  ;;  %v3108_v19 = vld [vmem:[#allocation2 + $0x5c0] sm:$0xff] }
 0x2a3   : > { %3667 = vmatpush1.bf16.msra.mxu1 %v3666_v40  ;;  %v3117_v40 = vld [vmem:[#allocation2 + $0x608] sm:$0xff]  ;;  %v3710_v42 = vpack.c.bf16 %v3108_v19, %v3100_v35  ;;  %v2963_v35 = vld [vmem:[#allocation2 + $0x138] sm:$0xff] }
 0x2a4   : > { %3669 = vmatprep.subr.bf16.mxu1 %v3668_v41  ;;  %v3125_v41 = vld [vmem:[#allocation2 + $0x648] sm:$0xff]  ;;  %v2971_v19 = vld [vmem:[#allocation2 + $0x178] sm:$0xff] }
 0x2a5   : > { %v3712_v43 = vpack.c.bf16 %v3125_v41, %v3117_v40  ;;  %v3862_v41 = vpack.c.bf16 %v2954_v31, %v2946_v30  ;;  %v3864_v58 = vpack.c.bf16 %v2971_v19, %v2963_v35  ;;  %v3034_v30 = vld [vmem:[#allocation2 + $0x370] sm:$0xff]  ;;  %v3041_v31 = vld [vmem:[#allocation2 + $0x3a8] sm:$0xff]  ;;  %v3040_v19 = vld [vmem:[#allocation2 + $0x3a0] sm:$0xff] }
 0x2a7   : > { %3671 = vmatpush1.bf16.msra.mxu1 %v3670_v13  ;;  %v3133_v13 = vld [vmem:[#allocation2 + $0x688] sm:$0xff] }
 0x2a8   : > { %3673 = vmatprep.subr.bf16.mxu1 %v3672_v1  ;;  %v3141_v1 = vld [vmem:[#allocation2 + $0x6c8] sm:$0xff] }
 0x2a9   : > { %v3716_v39 = vpack.c.bf16 %v3141_v1, %v3133_v13  ;;  %v2962_v13 = vld [vmem:[#allocation2 + $0x130] sm:$0xff] }
 0x2aa   : > { %v2970_v1 = vld [vmem:[#allocation2 + $0x170] sm:$0xff] }
 0x2ab   : > { %3675 = vmatpush1.bf16.msra.mxu1 %v3674_v45  ;;  %v3149_v45 = vld [vmem:[#allocation2 + $0x708] sm:$0xff] }
 0x2ac   : > { %3677 = vmatprep.subr.bf16.mxu1 %v3676_v47  ;;  %v3157_v47 = vld [vmem:[#allocation2 + $0x748] sm:$0xff] }
 0x2ad   : > { %v3720_v49 = vpack.c.bf16 %v3157_v47, %v3149_v45  ;;  %v3866_v47 = vpack.c.bf16 %v2970_v1, %v2962_v13  ;;  %v3065_v13 = vld [vmem:[#allocation2 + $0x468] sm:$0xff]  ;;  %v3059_v1 = vld [vmem:[#allocation2 + $0x438] sm:$0xff] }
 0x2af   : > { %3679 = vmatpush1.bf16.msra.mxu1 %v3678_v51  ;;  %v3722_v51 = vpack.c.bf16 %v3156_v14, %v3148_v33  ;;  %v3868_v14 = vpack.c.bf16 %v2987_v60, %v2979_v11  ;;  %v3056_v60 = vld [vmem:[#allocation2 + $0x420] sm:$0xff] }
 0x2b0   : > { %3681 = vmatprep.subr.bf16.mxu1 %v3680_v52  ;;  %v3165_v52 = vld [vmem:[#allocation2 + $0x788] sm:$0xff] }
 0x2b1   : > { %v3724_v36 = vpack.c.bf16 %v3173_v54, %v3165_v52  ;;  %v2986_v52 = vld [vmem:[#allocation2 + $0x1f0] sm:$0xff]  ;;  %v2993_v54 = vld [vmem:[#allocation2 + $0x228] sm:$0xff] }
 0x2b3   : > { %3683 = vmatpush1.bf16.msra.mxu1 %v3682_v53  ;;  %v3164_v53 = vld [vmem:[#allocation2 + $0x780] sm:$0xff] }
 0x2b4   : > { %3685 = vmatprep.subr.bf16.mxu1 %v3684_v56  ;;  %v3172_v56 = vld [vmem:[#allocation2 + $0x7c0] sm:$0xff] }
 0x2b5   : > { %v3726_v61 = vpack.c.bf16 %v3172_v56, %v3164_v53 }
 0x2b7   : > { %3687 = vmatpush1.bf16.msra.mxu1 %v3686_v12  ;;  %v3790_v12 = vpack.c.bf16 %v3174_v4, %v3166_v62  ;;  %v3808_v62 = vpack.c.bf16 %v3001_v55, %v2993_v54  ;;  %v3083_v54 = vld [vmem:[#allocation2 + $0x4f8] sm:$0xff] }
 0x2b8   : > { %3689 = vmatprep.subr.bf16.mxu1 %v3688_v63  ;;  %v2929_v63 = vld [vmem:[#allocation2 + $0x28] sm:$0xff] }
 0x2b9   : > { %3791 = vmatpush1.bf16.msra.mxu0 %v3790_v12  ;;  %v3792_v0 = vpack.c.bf16 %v2937_v9, %v2929_v63  ;;  %v2994_v12 = vld [vmem:[#allocation2 + $0x230] sm:$0xff]  ;;  %v3009_v9 = vld [vmem:[#allocation2 + $0x2a8] sm:$0xff] }
 0x2ba   : > { %v3002_v63 = vld [vmem:[#allocation2 + $0x270] sm:$0xff] }
 0x2bb   : > { %3691 = vmatpush1.bf16.msra.mxu1 %v3690_v8  ;;  %v3856_v8 = vpack.c.bf16 %v2939_v2, %v2931_v3  ;;  %v3017_v3 = vld [vmem:[#allocation2 + $0x2e8] sm:$0xff]  ;;  %v3019_v2 = vld [vmem:[#allocation2 + $0x2f8] sm:$0xff] }
 0x2bc   : > { %3693 = vmatprep.subr.bf16.mxu1 %v3692_v25  ;;  %v2918_v25 = vpop.permute.xlu0 %2917 }
 0x2bd   : > { %3857 = vmatprep.subr.bf16.mxu0 %v3856_v8 }
 0x2bf   : > { %3695 = vmatpush1.bf16.msra.mxu1 %v3694_v10  ;;  %v2936_v10 = vld [vmem:[#allocation2 + $0x60] sm:$0xff] }
 0x2c0   : > { %3697 = vmatprep.subr.bf16.mxu1 %v3696_v24  ;;  %v2930_v24 = vld [vmem:[#allocation2 + $0x30] sm:$0xff]  ;;  %v3794_v38 = vpack.c.bf16 %v2936_v10, %v2928_v5  ;;  %v3016_v5 = vld [vmem:[#allocation2 + $0x2e0] sm:$0xff] }
 0x2c1   : > { %v3858_v16 = vpack.c.bf16 %v2938_v26, %v2930_v24  ;;  %v3010_v10 = vld [vmem:[#allocation2 + $0x2b0] sm:$0xff]  ;;  %v3025_v26 = vld [vmem:[#allocation2 + $0x328] sm:$0xff] }
 0x2c2   : > { %v3018_v24 = vld [vmem:[#allocation2 + $0x2f0] sm:$0xff] }
 0x2c3   : > { %3699 = vmatpush1.bf16.msra.mxu1 %v3698_v22  ;;  %v2947_v22 = vld [vmem:[#allocation2 + $0xb8] sm:$0xff] }
 0x2c4   : > { %3701 = vmatprep.subr.bf16.mxu1 %v3700_v15  ;;  %v2955_v15 = vld [vmem:[#allocation2 + $0xf8] sm:$0xff] }
 0x2c7   : > { %3703 = vmatpush1.bf16.msra.mxu1 %v3702_v28  ;;  %v2952_v28 = vld [vmem:[#allocation2 + $0xe0] sm:$0xff] }
 0x2c8   : > { %3705 = vmatprep.subr.bf16.mxu1 %v3704_v29  ;;  %v3798_v40 = vpack.c.bf16 %v2952_v28, %v2944_v23  ;;  %v3880_v23 = vpack.c.bf16 %v3035_v20, %v3027_v18  ;;  %v3026_v28 = vld [vmem:[#allocation2 + $0x330] sm:$0xff]  ;;  %v3104_v20 = vld [vmem:[#allocation2 + $0x5a0] sm:$0xff] }
 0x2c9   : > { %v3882_v35 = vpack.c.bf16 %v3034_v30, %v3026_v28  ;;  %v3129_v28 = vld [vmem:[#allocation2 + $0x668] sm:$0xff]  ;;  %v3123_v30 = vld [vmem:[#allocation2 + $0x638] sm:$0xff] }
 0x2cb   : > { %3707 = vmatpush1.bf16.msra.mxu1 %v3706_v32  ;;  %v3860_v32 = vpack.c.bf16 %v2955_v15, %v2947_v22  ;;  %v3878_v15 = vpack.c.bf16 %v3018_v24, %v3010_v10  ;;  %v3113_v10 = vld [vmem:[#allocation2 + $0x5e8] sm:$0xff]  ;;  %v3107_v24 = vld [vmem:[#allocation2 + $0x5b8] sm:$0xff] }
 0x2cc   : > { %3709 = vmatprep.subr.bf16.mxu1 %v3708_v34  ;;  %v2969_v34 = vld [vmem:[#allocation2 + $0x168] sm:$0xff] }
 0x2cd   : > { %v3800_v44 = vpack.c.bf16 %v2969_v34, %v2961_v46  ;;  %v3049_v46 = vld [vmem:[#allocation2 + $0x3e8] sm:$0xff] }
 0x2cf   : > { %3711 = vmatpush1.bf16.msra.mxu1 %v3710_v42  ;;  %v2960_v42 = vld [vmem:[#allocation2 + $0x120] sm:$0xff] }
 0x2d0   : > { %3713 = vmatprep.subr.bf16.mxu1 %v3712_v43  ;;  %v2968_v43 = vld [vmem:[#allocation2 + $0x160] sm:$0xff] }
 0x2d1   : > { %v3802_v45 = vpack.c.bf16 %v2968_v43, %v2960_v42  ;;  %v3042_v43 = vld [vmem:[#allocation2 + $0x3b0] sm:$0xff] }
 0x2d3   : > { %3715 = vmatpush1.bf16.msra.mxu1 %v3714_v37  ;;  %v2977_v37 = vld [vmem:[#allocation2 + $0x1a8] sm:$0xff] }
 0x2d4   : > { %3717 = vmatprep.subr.bf16.mxu1 %v3716_v39  ;;  %v2985_v39 = vld [vmem:[#allocation2 + $0x1e8] sm:$0xff] }
 0x2d5   : > { %v3804_v33 = vpack.c.bf16 %v2985_v39, %v2977_v37  ;;  %v3067_v37 = vld [vmem:[#allocation2 + $0x478] sm:$0xff] }
 0x2d7   : > { %3719 = vmatpush1.bf16.msra.mxu1 %v3718_v48  ;;  %v2976_v48 = vld [vmem:[#allocation2 + $0x1a0] sm:$0xff] }
 0x2d8   : > { %3721 = vmatprep.subr.bf16.mxu1 %v3720_v49  ;;  %v2984_v49 = vld [vmem:[#allocation2 + $0x1e0] sm:$0xff] }
 0x2d9   : > { %v3806_v53 = vpack.c.bf16 %v2984_v49, %v2976_v48  ;;  %v3888_v48 = vpack.c.bf16 %v3067_v37, %v3059_v1  ;;  %v3058_v49 = vld [vmem:[#allocation2 + $0x430] sm:$0xff]  ;;  %v3136_v37 = vld [vmem:[#allocation2 + $0x6a0] sm:$0xff] }
 0x2db   : > { %3723 = vmatpush1.bf16.msra.mxu1 %v3722_v51  ;;  %v2978_v51 = vld [vmem:[#allocation2 + $0x1b0] sm:$0xff] }
 0x2dc   : > { %3725 = vmatprep.subr.bf16.mxu1 %v3724_v36  ;;  %v2995_v36 = vld [vmem:[#allocation2 + $0x238] sm:$0xff]  ;;  %v3870_v56 = vpack.c.bf16 %v2986_v52, %v2978_v51  ;;  %v3081_v51 = vld [vmem:[#allocation2 + $0x4e8] sm:$0xff] }
 0x2dd   : > { %v3872_v4 = vpack.c.bf16 %v3003_v57, %v2995_v36  ;;  %v3075_v52 = vld [vmem:[#allocation2 + $0x4b8] sm:$0xff]  ;;  %v3072_v57 = vld [vmem:[#allocation2 + $0x4a0] sm:$0xff] }
 0x2df   : > { %3727 = vmatpush1.bf16.msra.mxu1 %v3726_v61  ;;  %v3000_v61 = vld [vmem:[#allocation2 + $0x260] sm:$0xff] }
 0x2e0   : > { %3793 = vmatprep.subr.bf16.mxu1 %v3792_v0  ;;  %v3011_v0 = vld [vmem:[#allocation2 + $0x2b8] sm:$0xff]  ;;  %v3810_v8 = vpack.c.bf16 %v3000_v61, %v2992_v59  ;;  %v3892_v59 = vpack.c.bf16 %v3083_v54, %v3075_v52  ;;  %v3074_v61 = vld [vmem:[#allocation2 + $0x4b0] sm:$0xff]  ;;  %v3152_v54 = vld [vmem:[#allocation2 + $0x720] sm:$0xff] }
 0x375   : > { %v2907_v21 = vpop.f32.mrb[2].mxu1 }
 0x376   : > { %v2920_v6 = vadd.f32 %v2918_v25, %v2907_v21  ;;  %v2909_v7 = vpop.f32.mrb[3].mxu1  ;;  %v3008_v21 = vld [vmem:[#allocation2 + $0x2a0] sm:$0xff] }
 0x377   : > { %v2921_v17 = vadd.f32 %v2918_v25, %v2909_v7  ;;  %v3874_v25 = vpack.c.bf16 %v3002_v63, %v2994_v12  ;;  %v3876_v7 = vpack.c.bf16 %v3019_v2, %v3011_v0  ;;  %v3814_v22 = vpack.c.bf16 %v3016_v5, %v3008_v21  ;;  %v3097_v12 = vld [vmem:[#allocation2 + $0x568] sm:$0xff]  ;;  %v3091_v63 = vld [vmem:[#allocation2 + $0x538] sm:$0xff]  ;;  %v3088_v2 = vld [vmem:[#allocation2 + $0x520] sm:$0xff] }
 0x378   : > { %v4680_v29 = vmax.f32 %v2920_v6, 0.0  ;;  %v3812_v6 = vpack.c.bf16 %v3017_v3, %v3009_v9  ;;  %v3099_v9 = vld [vmem:[#allocation2 + $0x578] sm:$0xff]  ;;  %v3090_v5 = vld [vmem:[#allocation2 + $0x530] sm:$0xff] }
 0x379   : > { %v2923_v27 = vmax.f32 %v2921_v17, 0.0  ;;  %v3033_v17 = vld [vmem:[#allocation2 + $0x368] sm:$0xff]  ;;  %v3896_v21 = vpack.c.bf16 %v3099_v9, %v3091_v63  ;;  %v3168_v9 = vld [vmem:[#allocation2 + $0x7a0] sm:$0xff] }
 0x37b   : > { %3244 = vmatprep.mubr.f32.mxu1 %v2923_v27  ;;  %3315 = vmatprep.mubr.f32.mxu0 %v2923_v27 }
 0x37c   : > { %3245 = vmatmul.mubr.f32.vlgmr.msra.gmra.mrb[4].mxu1 %v4680_v29  ;;  %3316 = vmatmul.mubr.f32.vlgmr.msra.gmra.mrb[2].mxu0 %v4680_v29 }
 0x37d   : > { %3795 = vmatpush1.bf16.msra.mxu1 %v3794_v38  ;;  %3859 = vmatpush1.bf16.msra.mxu0 %v3858_v16  ;;  %v3032_v38 = vld [vmem:[#allocation2 + $0x360] sm:$0xff]  ;;  %v3816_v16 = vpack.c.bf16 %v3033_v17, %v3025_v26  ;;  %v3115_v26 = vld [vmem:[#allocation2 + $0x5f8] sm:$0xff] }
 0x37e   : > { %3386 = vmatprep.mubr.f32.mxu1 %v2923_v27  ;;  %3457 = vmatprep.mubr.f32.mxu0 %v2923_v27  ;;  %v3024_v27 = vld [vmem:[#allocation2 + $0x320] sm:$0xff] }
 0x37f   : > { %3797 = vmatprep.subr.bf16.mxu1 %v3796_v50  ;;  %3861 = vmatprep.subr.bf16.mxu0 %v3860_v32  ;;  %v3043_v50 = vld [vmem:[#allocation2 + $0x3b8] sm:$0xff]  ;;  %v3818_v34 = vpack.c.bf16 %v3032_v38, %v3024_v27  ;;  %v3900_v27 = vpack.c.bf16 %v3115_v26, %v3107_v24  ;;  %v3106_v38 = vld [vmem:[#allocation2 + $0x5b0] sm:$0xff] }
 0x380   : > { %v3051_v32 = vld [vmem:[#allocation2 + $0x3f8] sm:$0xff] }
 0x381   : > { %3799 = vmatpush1.bf16.msra.mxu1 %v3798_v40  ;;  %3863 = vmatpush1.bf16.msra.mxu0 %v3862_v41  ;;  %v3048_v40 = vld [vmem:[#allocation2 + $0x3e0] sm:$0xff]  ;;  %v3820_v41 = vpack.c.bf16 %v3049_v46, %v3041_v31  ;;  %v3884_v42 = vpack.c.bf16 %v3051_v32, %v3043_v50  ;;  %v3131_v31 = vld [vmem:[#allocation2 + $0x678] sm:$0xff] }
 0x382   : > { %3801 = vmatprep.subr.bf16.mxu1 %v3800_v44  ;;  %3865 = vmatprep.subr.bf16.mxu0 %v3864_v58  ;;  %v3050_v44 = vld [vmem:[#allocation2 + $0x3f0] sm:$0xff]  ;;  %v3057_v58 = vld [vmem:[#allocation2 + $0x428] sm:$0xff]  ;;  %v3822_v39 = vpack.c.bf16 %v3048_v40, %v3040_v19  ;;  %v3120_v32 = vld [vmem:[#allocation2 + $0x620] sm:$0xff]  ;;  %v3904_v19 = vpack.c.bf16 %v3131_v31, %v3123_v30 }
 0x383   : > { %v3886_v11 = vpack.c.bf16 %v3050_v44, %v3042_v43  ;;  %v3122_v40 = vld [vmem:[#allocation2 + $0x630] sm:$0xff]  ;;  %v3145_v43 = vld [vmem:[#allocation2 + $0x6e8] sm:$0xff]  ;;  %v3139_v44 = vld [vmem:[#allocation2 + $0x6b8] sm:$0xff] }
 0x385   : > { %3803 = vmatpush1.bf16.msra.mxu1 %v3802_v45  ;;  %3867 = vmatpush1.bf16.msra.mxu0 %v3866_v47  ;;  %v3064_v45 = vld [vmem:[#allocation2 + $0x460] sm:$0xff]  ;;  %v3824_v47 = vpack.c.bf16 %v3065_v13, %v3057_v58  ;;  %v3147_v58 = vld [vmem:[#allocation2 + $0x6f8] sm:$0xff] }
 0x386   : > { %3805 = vmatprep.subr.bf16.mxu1 %v3804_v33  ;;  %3869 = vmatprep.subr.bf16.mxu0 %v3868_v14  ;;  %v3066_v33 = vld [vmem:[#allocation2 + $0x470] sm:$0xff]  ;;  %v3073_v14 = vld [vmem:[#allocation2 + $0x4a8] sm:$0xff]  ;;  %v3826_v55 = vpack.c.bf16 %v3064_v45, %v3056_v60  ;;  %v3908_v60 = vpack.c.bf16 %v3147_v58, %v3139_v44 }
 0x387   : > { %v3890_v36 = vpack.c.bf16 %v3066_v33, %v3058_v49  ;;  %v3138_v45 = vld [vmem:[#allocation2 + $0x6b0] sm:$0xff]  ;;  %v3161_v49 = vld [vmem:[#allocation2 + $0x768] sm:$0xff]  ;;  %v3155_v33 = vld [vmem:[#allocation2 + $0x738] sm:$0xff] }
 0x389   : > { %3807 = vmatpush1.bf16.msra.mxu1 %v3806_v53  ;;  %3871 = vmatpush1.bf16.msra.mxu0 %v3870_v56  ;;  %v3080_v53 = vld [vmem:[#allocation2 + $0x4e0] sm:$0xff]  ;;  %v3828_v56 = vpack.c.bf16 %v3081_v51, %v3073_v14  ;;  %v3163_v14 = vld [vmem:[#allocation2 + $0x778] sm:$0xff] }
 0x38a   : > { %3809 = vmatprep.subr.bf16.mxu1 %v3808_v62  ;;  %3873 = vmatprep.subr.bf16.mxu0 %v3872_v4  ;;  %v3082_v62 = vld [vmem:[#allocation2 + $0x4f0] sm:$0xff]  ;;  %v3089_v4 = vld [vmem:[#allocation2 + $0x528] sm:$0xff]  ;;  %v3830_v3 = vpack.c.bf16 %v3080_v53, %v3072_v57  ;;  %v3912_v57 = vpack.c.bf16 %v3163_v14, %v3155_v33 }
 0x38b   : > { %v3894_v0 = vpack.c.bf16 %v3082_v62, %v3074_v61  ;;  %v3154_v53 = vld [vmem:[#allocation2 + $0x730] sm:$0xff]  ;;  %v3177_v61 = vld [vmem:[#allocation2 + $0x7e8] sm:$0xff]  ;;  %v3171_v62 = vld [vmem:[#allocation2 + $0x7b8] sm:$0xff] }
 0x38d   : > { %3811 = vmatpush1.bf16.msra.mxu1 %v3810_v8  ;;  %3875 = vmatpush1.bf16.msra.mxu0 %v3874_v25  ;;  %v3096_v8 = vld [vmem:[#allocation2 + $0x560] sm:$0xff]  ;;  %v3832_v25 = vpack.c.bf16 %v3097_v12, %v3089_v4  ;;  %v3179_v4 = vld [vmem:[#allocation2 + $0x7f8] sm:$0xff] }
 0x38e   : > { %3813 = vmatprep.subr.bf16.mxu1 %v3812_v6  ;;  %3877 = vmatprep.subr.bf16.mxu0 %v3876_v7  ;;  %v3098_v6 = vld [vmem:[#allocation2 + $0x570] sm:$0xff]  ;;  %v3105_v7 = vld [vmem:[#allocation2 + $0x5a8] sm:$0xff]  ;;  %v3834_v17 = vpack.c.bf16 %v3096_v8, %v3088_v2  ;;  %v3176_v2 = vld [vmem:[#allocation2 + $0x7e0] sm:$0xff] }
 0x38f   : > { %v3898_v18 = vpack.c.bf16 %v3098_v6, %v3090_v5  ;;  %v3170_v8 = vld [vmem:[#allocation2 + $0x7b0] sm:$0xff] }
 0x391   : > { %3815 = vmatpush1.bf16.msra.mxu1 %v3814_v22  ;;  %3879 = vmatpush1.bf16.msra.mxu0 %v3878_v15  ;;  %v3112_v22 = vld [vmem:[#allocation2 + $0x5e0] sm:$0xff]  ;;  %v3836_v15 = vpack.c.bf16 %v3113_v10, %v3105_v7 }
 0x392   : > { %3817 = vmatprep.subr.bf16.mxu1 %v3816_v16  ;;  %3881 = vmatprep.subr.bf16.mxu0 %v3880_v23  ;;  %v3114_v16 = vld [vmem:[#allocation2 + $0x5f0] sm:$0xff]  ;;  %v3121_v23 = vld [vmem:[#allocation2 + $0x628] sm:$0xff]  ;;  %v3838_v46 = vpack.c.bf16 %v3112_v22, %v3104_v20 }
 0x393   : > { %v3902_v50 = vpack.c.bf16 %v3114_v16, %v3106_v38 }
 0x395   : > { %3819 = vmatpush1.bf16.msra.mxu1 %v3818_v34  ;;  %3883 = vmatpush1.bf16.msra.mxu0 %v3882_v35  ;;  %v3128_v34 = vld [vmem:[#allocation2 + $0x660] sm:$0xff]  ;;  %v3840_v35 = vpack.c.bf16 %v3129_v28, %v3121_v23 }
 0x396   : > { %3821 = vmatprep.subr.bf16.mxu1 %v3820_v41  ;;  %3885 = vmatprep.subr.bf16.mxu0 %v3884_v42  ;;  %v3130_v41 = vld [vmem:[#allocation2 + $0x670] sm:$0xff]  ;;  %v3137_v42 = vld [vmem:[#allocation2 + $0x6a8] sm:$0xff]  ;;  %v3842_v13 = vpack.c.bf16 %v3128_v34, %v3120_v32 }
 0x397   : > { %v3906_v1 = vpack.c.bf16 %v3130_v41, %v3122_v40 }
 0x399   : > { %3823 = vmatpush1.bf16.msra.mxu1 %v3822_v39  ;;  %3887 = vmatpush1.bf16.msra.mxu0 %v3886_v11  ;;  %v3144_v39 = vld [vmem:[#allocation2 + $0x6e0] sm:$0xff]  ;;  %v3844_v11 = vpack.c.bf16 %v3145_v43, %v3137_v42 }
 0x39a   : > { %3825 = vmatprep.subr.bf16.mxu1 %v3824_v47  ;;  %3889 = vmatprep.subr.bf16.mxu0 %v3888_v48  ;;  %v3146_v47 = vld [vmem:[#allocation2 + $0x6f0] sm:$0xff]  ;;  %v3153_v48 = vld [vmem:[#allocation2 + $0x728] sm:$0xff]  ;;  %v3846_v51 = vpack.c.bf16 %v3144_v39, %v3136_v37 }
 0x39b   : > { %v3910_v52 = vpack.c.bf16 %v3146_v47, %v3138_v45 }
 0x39d   : > { %3827 = vmatpush1.bf16.msra.mxu1 %v3826_v55  ;;  %3891 = vmatpush1.bf16.msra.mxu0 %v3890_v36  ;;  %v3160_v55 = vld [vmem:[#allocation2 + $0x760] sm:$0xff]  ;;  %v3848_v36 = vpack.c.bf16 %v3161_v49, %v3153_v48 }
 0x39e   : > { %3829 = vmatprep.subr.bf16.mxu1 %v3828_v56  ;;  %3893 = vmatprep.subr.bf16.mxu0 %v3892_v59  ;;  %v3162_v56 = vld [vmem:[#allocation2 + $0x770] sm:$0xff]  ;;  %v3169_v59 = vld [vmem:[#allocation2 + $0x7a8] sm:$0xff]  ;;  %v3850_v12 = vpack.c.bf16 %v3160_v55, %v3152_v54 }
 0x39f   : > { %v3914_v63 = vpack.c.bf16 %v3162_v56, %v3154_v53 }
 0x3a1   : > { %3831 = vmatpush1.bf16.msra.mxu1 %v3830_v3  ;;  %3895 = vmatpush1.bf16.msra.mxu0 %v3894_v0  ;;  %v3852_v3 = vpack.c.bf16 %v3177_v61, %v3169_v59  ;;  %v3916_v0 = vpack.c.bf16 %v3179_v4, %v3171_v62 }
 0x3a2   : > { %3833 = vmatprep.subr.bf16.mxu1 %v3832_v25  ;;  %3897 = vmatprep.subr.bf16.mxu0 %v3896_v21  ;;  %v3178_v25 = vld [vmem:[#allocation2 + $0x7f0] sm:$0xff]  ;;  %v3854_v21 = vpack.c.bf16 %v3176_v2, %v3168_v9 }
 0x3a3   : > { %v3918_v5 = vpack.c.bf16 %v3178_v25, %v3170_v8 }
 0x3a5   : > { %3835 = vmatpush1.bf16.msra.mxu1 %v3834_v17  ;;  %3899 = vmatpush1.bf16.msra.mxu0 %v3898_v18 }
 0x3a6   : > { %3837 = vmatprep.subr.bf16.mxu1 %v3836_v15  ;;  %3901 = vmatprep.subr.bf16.mxu0 %v3900_v27 }
 0x3a9   : > { %3839 = vmatpush1.bf16.msra.mxu1 %v3838_v46  ;;  %3903 = vmatpush1.bf16.msra.mxu0 %v3902_v50 }
 0x3aa   : > { %3841 = vmatprep.subr.bf16.mxu1 %v3840_v35  ;;  %3905 = vmatprep.subr.bf16.mxu0 %v3904_v19 }
 0x3ad   : > { %3843 = vmatpush1.bf16.msra.mxu1 %v3842_v13  ;;  %3907 = vmatpush1.bf16.msra.mxu0 %v3906_v1 }
 0x3ae   : > { %3845 = vmatprep.subr.bf16.mxu1 %v3844_v11  ;;  %3909 = vmatprep.subr.bf16.mxu0 %v3908_v60 }
 0x3b1   : > { %3847 = vmatpush1.bf16.msra.mxu1 %v3846_v51  ;;  %3911 = vmatpush1.bf16.msra.mxu0 %v3910_v52 }
 0x3b2   : > { %3849 = vmatprep.subr.bf16.mxu1 %v3848_v36  ;;  %3913 = vmatprep.subr.bf16.mxu0 %v3912_v57 }
 0x3b5   : > { %3851 = vmatpush1.bf16.msra.mxu1 %v3850_v12  ;;  %3915 = vmatpush1.bf16.msra.mxu0 %v3914_v63 }
 0x3b6   : > { %3853 = vmatprep.subr.bf16.mxu1 %v3852_v3  ;;  %3917 = vmatprep.subr.bf16.mxu0 %v3916_v0 }
 0x3b9   : > { %3855 = vmatpush1.bf16.msra.mxu1 %v3854_v21  ;;  %3919 = vmatpush1.bf16.msra.mxu0 %v3918_v5 }
 0x3bc   : > { %3387 = vmatmul.mubr.f32.vlgmr.msra.gmra.mrb[6].mxu1 %v4680_v29  ;;  %3458 = vmatmul.mubr.f32.vlgmr.msra.gmra.mrb[4].mxu0 %v4680_v29 }
 0x44f   : > { %v3246_v6 = vpop.f32.mrb[4].mxu1  ;;  %v3317_v7 = vpop.f32.mrb[2].mxu0 }
 0x450   : > { %3464 = vst [vmem:[%s367_s19] sm:$0xff] %v3246_v6  ;;  %3466 = vst [vmem:[%s367_s19 + $0x10] sm:$0xff] %v3317_v7  ;;  %v3248_v10 = vpop.f32.mrb[5].mxu1  ;;  %v3319_v24 = vpop.f32.mrb[3].mxu0 }
 0x451   : > { %3465 = vst [vmem:[%s367_s19 + $0x8] sm:$0xff] %v3248_v10  ;;  %3467 = vst [vmem:[%s367_s19 + $0x18] sm:$0xff] %v3319_v24 }
 0x48f   : > { %v3388_v26 = vpop.f32.mrb[6].mxu1  ;;  %v3459_v17 = vpop.f32.mrb[4].mxu0 }
 0x490   : > { %3468 = vst [vmem:[%s367_s19 + $0x20] sm:$0xff] %v3388_v26  ;;  %3470 = vst [vmem:[%s367_s19 + $0x30] sm:$0xff] %v3459_v17  ;;  %v3390_v18 = vpop.f32.mrb[7].mxu1  ;;  %v3461_v20 = vpop.f32.mrb[5].mxu0 }
 0x491   : > { %3469 = vst [vmem:[%s367_s19 + $0x28] sm:$0xff] %v3390_v18  ;;  %3471 = vst [vmem:[%s367_s19 + $0x38] sm:$0xff] %v3461_v20 }
 0x492 PF: > { %s20_s30 = sadd.s32 1, %s4042_s30  }
 0x493   : > { %p17_p3 = scmp.ge.s32.totalorder %s20_s30, 4  }
 0x495   :  { %19 = sbr.rel (!%p17_p3) target bundleno = 1 (0x1), region = 126 }
 0x49c   :  { %3493 = vsyncpa [#allocation3], 1 }
 0x49d   :  { %3495 = vsyncpa [#allocation3 + $0x1], 1 }

</bundles_post_ra>
